<compile_context>
chip_gen: v5e
topology: v5e:2x2
jax: 0.10.0
libtpu: 0.0.40
codegen_flags: <defaults>
</compile_context>

<pallas_src>
import jax
import jax.numpy as jnp
from jax import lax
from jax.experimental import pallas as pl
from jax.experimental.pallas import tpu as pltpu

_LANE = 128


def _round_up(x, m):
    return (x + m - 1) // m * m


def _vmem_capacity_bytes():
    try:
        return int(pltpu.get_tpu_info().vmem_capacity_bytes)
    except Exception:
        return 64 * 1024 * 1024  # conservative: v7x per-TensorCore VMEM


def _need_bytes(t, h, in_bytes, desc_rows):
    # double-buffered code tile + desc block, f32 temporaries for the [t, t]
    # sim tile (sim / exp / compare), lane-sparse scratch + output blocks.
    return (2 * t * h * in_bytes            # code tile (double-buffered)
            + 2 * desc_rows * h * in_bytes  # desc tile or resident desc
            + 4 * t * t * 4                 # sim + elementwise temporaries
            + 16 * t * 4)                   # scratch + output blocks (approx)


def _make_kernel(b_real, tile, nk, npad, desc_resident):
    def kernel(code_ref, desc_ref, loss_ref, rr_ref, m_sc, l_sc, cnt_sc, diag_sc):
        qi = pl.program_id(0)
        ki = pl.program_id(1)
        # Column tiles are rotated so ki == 0 is the diagonal block.
        col_tile = (qi + ki) % nk

        if desc_resident:
            off = pl.multiple_of(col_tile * tile, tile)
            desc = desc_ref[pl.ds(off, tile), :]          # [TK, H] slice in VMEM
        else:
            desc = desc_ref[...]                          # streamed [TK, H] block

        # sim[r, c] = <code_r, desc_c>: contract H of both operands (no rhs
        # pre-transpose, no strided DMA), MXU with f32 accumulation, inputs in
        # their native dtype.
        sim = lax.dot_general(
            code_ref[...], desc,
            dimension_numbers=(((1,), (1,)), ((), ())),
            preferred_element_type=jnp.float32)           # [TQ, TK] f32

        if npad:
            # Mask padded desc columns out of the softmax and the rank count.
            col_ids = (lax.broadcasted_iota(jnp.int32, sim.shape, 1)
                       + col_tile * tile)
            sim = jnp.where(col_ids < b_real, sim, -jnp.inf)

        @pl.when(ki == 0)
        def _init():
            # Diagonal block first: extract sim[i, i] from the MXU result so
            # the MRR self-comparison is exact.
            rid = lax.broadcasted_iota(jnp.int32, sim.shape, 0)
            cid = lax.broadcasted_iota(jnp.int32, sim.shape, 1)
            diag_sc[...] = jnp.sum(jnp.where(rid == cid, sim, 0.0),
                                   axis=-1, keepdims=True)
            m_sc[...] = jnp.full_like(m_sc, -jnp.inf)
            l_sc[...] = jnp.zeros_like(l_sc)
            cnt_sc[...] = jnp.zeros_like(cnt_sc)

        # One fused traversal of the tile: online logsumexp + online rank count.
        m_prev = m_sc[...]
        m_new = jnp.maximum(m_prev, jnp.max(sim, axis=-1, keepdims=True))
        p = jnp.exp(sim - m_new)
        l_sc[...] = (jnp.exp(m_prev - m_new) * l_sc[...]
                     + jnp.sum(p, axis=-1, keepdims=True))
        m_sc[...] = m_new
        cnt_sc[...] += jnp.sum((sim >= diag_sc[...]).astype(jnp.float32),
                               axis=-1, keepdims=True)

        @pl.when(ki == nk - 1)
        def _finalize():
            lse = m_sc[...] + jnp.log(l_sc[...])          # [TQ, 1]
            loss_ref[...] = lse - diag_sc[...]            # per-example CE
            rr_ref[...] = 1.0 / cnt_sc[...]               # exact reciprocal (MRR)

    return kernel


def softmax_retrieval_loss(encoded_code, encoded_desc, *, use_bf16_matmul=False):
    """Returns (loss, mrr) as float32 scalars, matching the PyTorch module."""
    b, h = encoded_code.shape
    assert encoded_desc.shape == (b, h)
    assert b < (1 << 24)  # f32 count accumulation is exact below 2^24 per row

    code, desc = encoded_code, encoded_desc
    if use_bf16_matmul and code.dtype == jnp.float32:
        # Optional MXU-rate win on v5e/v6e; can flip '>=' near-ties (MRR).
        code = code.astype(jnp.bfloat16)
        desc = desc.astype(jnp.bfloat16)
    in_bytes = jnp.dtype(code.dtype).itemsize

    # Pad the batch to a lane-aligned size; padded columns are masked to -inf
    # in the kernel and padded rows dropped before the final means.
    bp = max(_round_up(b, _LANE), _LANE)
    npad = bp - b
    if npad:
        code = jnp.pad(code, ((0, npad), (0, 0)))
        desc = jnp.pad(desc, ((0, npad), (0, 0)))

    cap = _vmem_capacity_bytes()
    budget = min(int(cap * 0.7), 48 * 1024 * 1024)

    # VMEM-budgeted square tile; keep >= 2 query tiles whenever possible so
    # the "parallel" qi axis occupies both v7x TensorCores.
    tile = _LANE
    for t in (512, 256, 128):
        if bp % t != 0:
            continue
        if bp > _LANE and bp // t < 2:
            continue
        if _need_bytes(t, h, in_bytes, t) <= budget:
            tile = t
            break
    nq = nk = bp // tile

    # Resident desc when it fits comfortably: removes (nq-1)x HBM re-streaming.
    desc_resident = nq > 1 and _need_bytes(tile, h, in_bytes, bp) <= budget
    if desc_resident:
        desc_spec = pl.BlockSpec((bp, h), lambda qi, ki: (0, 0))
        need = _need_bytes(tile, h, in_bytes, bp)
    else:
        desc_spec = pl.BlockSpec((tile, h), lambda qi, ki: ((qi + ki) % nk, 0))
        need = _need_bytes(tile, h, in_bytes, tile)

    vmem_limit = int(min(cap, max(2 * need, 48 * 1024 * 1024)))

    kernel = _make_kernel(b, tile, nk, npad, desc_resident)

    # NOTE: per-example outputs stay (Bp, 1)/(T, 1) blocks; they are written
    # only once per query tile so the lane-sparse store cost is negligible.
    loss_pe, rr_pe = pl.pallas_call(
        kernel,
        grid=(nq, nk),
        out_shape=(
            jax.ShapeDtypeStruct((bp, 1), jnp.float32),
            jax.ShapeDtypeStruct((bp, 1), jnp.float32),
        ),
        in_specs=[
            pl.BlockSpec((tile, h), lambda qi, ki: (qi, 0)),
            desc_spec,
        ],
        out_specs=(
            pl.BlockSpec((tile, 1), lambda qi, ki: (qi, 0)),
            pl.BlockSpec((tile, 1), lambda qi, ki: (qi, 0)),
        ),
        scratch_shapes=[pltpu.VMEM((tile, 1), jnp.float32)] * 4,  # m, l, cnt, diag
        compiler_params=pltpu.CompilerParams(
            dimension_semantics=("parallel", "arbitrary"),
            vmem_limit_bytes=vmem_limit),
        cost_estimate=pl.CostEstimate(
            flops=2 * bp * bp * h,
            transcendentals=bp * bp,
            bytes_accessed=2 * bp * h * in_bytes + 8 * bp),
    )(code, desc)

    loss = jnp.mean(loss_pe[:b, 0])
    mrr = jnp.mean(rr_pe[:b, 0])
    return loss, mrr


def _reference(encoded_code, encoded_desc):
    # Pure-JAX mirror of the PyTorch forward, for sanity checking.
    sim = encoded_code @ encoded_desc.T
    lse = jax.scipy.special.logsumexp(sim, axis=-1)
    diag = jnp.diagonal(sim)
    loss = jnp.mean(lse - diag)
    counts = jnp.sum((sim >= diag[:, None]).astype(jnp.float32), axis=-1)
    mrr = jnp.mean(1.0 / counts)
    return loss, mrr


if __name__ == "__main__":
    fn = jax.jit(softmax_retrieval_loss)
    key = jax.random.PRNGKey(0)
    k1, k2, k3, k4 = jax.random.split(key, 4)

    # Case 1: small exact case (single padded 128x128 tile).
    b, h = 8, 32
    code = jax.random.normal(k1, (b, h), dtype=jnp.float32)
    desc = jax.random.normal(k2, (b, h), dtype=jnp.float32)
    loss, mrr = fn(code, desc)
    jax.block_until_ready((loss, mrr))
    ref_loss, ref_mrr = _reference(code, desc)
    assert jnp.allclose(loss, ref_loss, atol=1e-5, rtol=1e-5), (loss, ref_loss)
    assert jnp.allclose(mrr, ref_mrr, atol=1e-5, rtol=1e-5), (mrr, ref_mrr)

    # Case 2: multi-tile case — exercises batch padding (300 -> 384), the
    # rotated column-tile traversal, and the resident-desc + pl.ds path.
    b2, h2 = 300, 64
    code2 = jax.random.normal(k3, (b2, h2), dtype=jnp.float32)
    desc2 = jax.random.normal(k4, (b2, h2), dtype=jnp.float32)
    loss2, mrr2 = fn(code2, desc2)
    jax.block_until_ready((loss2, mrr2))
    ref_loss2, ref_mrr2 = _reference(code2, desc2)
    assert jnp.allclose(loss2, ref_loss2, atol=1e-4, rtol=1e-4), (loss2, ref_loss2)
    # accumulation-order near-ties can flip a single '>=' rank count; a
    # one-rank flip moves MRR by <= ~1.7e-3 at this batch size.
    assert jnp.allclose(mrr2, ref_mrr2, atol=2e-3, rtol=1e-3), (mrr2, ref_mrr2)

    print("KERNEL_OK")
</pallas_src>

<mosaic_0001>
module attributes {stable_mosaic.version = 11 : i64} {
  func.func @kernel(%arg0: i32, %arg1: i32, %arg2: memref<128x32xf32, #tpu.memory_space<vmem>>, %arg3: memref<128x32xf32, #tpu.memory_space<vmem>>, %arg4: memref<128x1xf32, #tpu.memory_space<vmem>>, %arg5: memref<128x1xf32, #tpu.memory_space<vmem>>, %arg6: memref<128x1xf32, #tpu.memory_space<vmem>>, %arg7: memref<128x1xf32, #tpu.memory_space<vmem>>, %arg8: memref<128x1xf32, #tpu.memory_space<vmem>>, %arg9: memref<128x1xf32, #tpu.memory_space<vmem>>) attributes {dimension_semantics = [#tpu.dimension_semantics<parallel>, #tpu.dimension_semantics<arbitrary>], iteration_bounds = array<i64: 1, 1>, scalar_prefetch = 0 : i64, scratch_operands = 4 : i64, tpu.core_type = #tpu.core_type<tc>, window_params = [{transform_indices = @transform_0, window_bounds = array<i64: 128, 32>}, {transform_indices = @transform_1, window_bounds = array<i64: 128, 32>}, {transform_indices = @transform_2, window_bounds = array<i64: 128, 1>}, {transform_indices = @transform_3, window_bounds = array<i64: 128, 1>}]} {
    %0 = arith.addi %arg0, %arg1 : i32
    %c1_i32 = arith.constant 1 : i32
    %c0_i32 = arith.constant 0 : i32
    %1 = arith.cmpi eq, %c1_i32, %c0_i32 : i32
    %c1_i32_0 = arith.constant 1 : i32
    %2 = arith.select %1, %c1_i32_0, %c1_i32 : i32
    %3 = arith.remsi %0, %2 : i32
    %c0_i32_1 = arith.constant 0 : i32
    %4 = arith.cmpi ne, %3, %c0_i32_1 : i32
    %c0_i32_2 = arith.constant 0 : i32
    %5 = arith.cmpi slt, %3, %c0_i32_2 : i32
    %c0_i32_3 = arith.constant 0 : i32
    %6 = arith.cmpi slt, %2, %c0_i32_3 : i32
    %7 = arith.xori %5, %6 : i1
    %8 = arith.andi %7, %4 : i1
    %9 = arith.addi %3, %2 : i32
    %10 = arith.select %8, %9, %3 : i32
    %c0 = arith.constant 0 : index
    %c0_4 = arith.constant 0 : index
    %11 = vector.load %arg3[%c0, %c0_4] : memref<128x32xf32, #tpu.memory_space<vmem>>, vector<128x32xf32>
    %c0_5 = arith.constant 0 : index
    %c0_6 = arith.constant 0 : index
    %12 = vector.load %arg2[%c0_5, %c0_6] : memref<128x32xf32, #tpu.memory_space<vmem>>, vector<128x32xf32>
    %cst = arith.constant dense<0.000000e+00> : vector<128x128xf32>
    %13 = tpu.matmul %12, %11, %cst {dimension_numbers = #tpu.dot_dimension_numbers<[1], [1], [0], [0], [0, 0, 1, 0], [], []>} : vector<128x32xf32>, vector<128x32xf32>, vector<128x128xf32> -> vector<128x128xf32>
    %14 = tpu.iota {dimensions = array<i32: 1>} : vector<128x128xi32>
    %c128_i32 = arith.constant 128 : i32
    %15 = arith.muli %10, %c128_i32 : i32
    %16 = vector.broadcast %15 : i32 to vector<128x128xi32>
    %17 = arith.addi %14, %16 : vector<128x128xi32>
    %c8_i32 = arith.constant 8 : i32
    %18 = vector.broadcast %c8_i32 : i32 to vector<128x128xi32>
    %19 = arith.cmpi slt, %17, %18 : vector<128x128xi32>
    %cst_7 = arith.constant 0xFF800000 : f32
    %20 = vector.broadcast %cst_7 : f32 to vector<128x128xf32>
    %21 = arith.select %19, %13, %20 : vector<128x128xi1>, vector<128x128xf32>
    %c0_i32_8 = arith.constant 0 : i32
    %22 = arith.cmpi eq, %arg1, %c0_i32_8 : i32
    %23 = arith.extui %22 : i1 to i32
    %c0_i32_9 = arith.constant 0 : i32
    %24 = arith.cmpi ne, %23, %c0_i32_9 : i32
    scf.if %24 {
      %54 = tpu.iota {dimensions = array<i32: 0>} : vector<128x128xi32>
      %55 = tpu.iota {dimensions = array<i32: 1>} : vector<128x128xi32>
      %56 = arith.cmpi eq, %54, %55 : vector<128x128xi32>
      %cst_29 = arith.constant 0.000000e+00 : f32
      %57 = vector.broadcast %cst_29 : f32 to vector<128x128xf32>
      %58 = arith.select %56, %21, %57 : vector<128x128xi1>, vector<128x128xf32>
      %cst_30 = arith.constant dense<0.000000e+00> : vector<128xf32>
      %59 = vector.multi_reduction <add>, %58, %cst_30 [1] : vector<128x128xf32> to vector<128xf32>
      %60 = vector.shape_cast %59 : vector<128xf32> to vector<128x1xf32>
      %c0_31 = arith.constant 0 : index
      %c0_32 = arith.constant 0 : index
      %61 = vector.load %arg9[%c0_31, %c0_32] : memref<128x1xf32, #tpu.memory_space<vmem>>, vector<128x1xf32>
      tpu.vector_store %arg9[%c0_31, %c0_32], %60 {strides = array<i32>} : memref<128x1xf32, #tpu.memory_space<vmem>>, vector<128x1xf32>,
      %cst_33 = arith.constant 0xFF800000 : f32
      %62 = vector.broadcast %cst_33 : f32 to vector<128x1xf32>
      %c0_34 = arith.constant 0 : index
      %c0_35 = arith.constant 0 : index
      %63 = vector.load %arg6[%c0_34, %c0_35] : memref<128x1xf32, #tpu.memory_space<vmem>>, vector<128x1xf32>
      tpu.vector_store %arg6[%c0_34, %c0_35], %62 {strides = array<i32>} : memref<128x1xf32, #tpu.memory_space<vmem>>, vector<128x1xf32>,
      %cst_36 = arith.constant 0.000000e+00 : f32
      %64 = vector.broadcast %cst_36 : f32 to vector<128x1xf32>
      %c0_37 = arith.constant 0 : index
      %c0_38 = arith.constant 0 : index
      %65 = vector.load %arg7[%c0_37, %c0_38] : memref<128x1xf32, #tpu.memory_space<vmem>>, vector<128x1xf32>
      tpu.vector_store %arg7[%c0_37, %c0_38], %64 {strides = array<i32>} : memref<128x1xf32, #tpu.memory_space<vmem>>, vector<128x1xf32>,
      %cst_39 = arith.constant 0.000000e+00 : f32
      %66 = vector.broadcast %cst_39 : f32 to vector<128x1xf32>
      %c0_40 = arith.constant 0 : index
      %c0_41 = arith.constant 0 : index
      %67 = vector.load %arg8[%c0_40, %c0_41] : memref<128x1xf32, #tpu.memory_space<vmem>>, vector<128x1xf32>
      tpu.vector_store %arg8[%c0_40, %c0_41], %66 {strides = array<i32>} : memref<128x1xf32, #tpu.memory_space<vmem>>, vector<128x1xf32>,
    } else {
    }
    %c0_10 = arith.constant 0 : index
    %c0_11 = arith.constant 0 : index
    %25 = vector.load %arg6[%c0_10, %c0_11] : memref<128x1xf32, #tpu.memory_space<vmem>>, vector<128x1xf32>
    %cst_12 = arith.constant dense<0xFF800000> : vector<128xf32>
    %26 = vector.multi_reduction <maximumf>, %21, %cst_12 [1] : vector<128x128xf32> to vector<128xf32>
    %27 = vector.shape_cast %26 : vector<128xf32> to vector<128x1xf32>
    %28 = arith.maximumf %25, %27 : vector<128x1xf32>
    %29 = vector.broadcast %28 : vector<128x1xf32> to vector<128x128xf32>
    %30 = arith.subf %21, %29 : vector<128x128xf32>
    %31 = math.exp %30 : vector<128x128xf32>
    %32 = arith.subf %25, %28 : vector<128x1xf32>
    %33 = math.exp %32 : vector<128x1xf32>
    %c0_13 = arith.constant 0 : index
    %c0_14 = arith.constant 0 : index
    %34 = vector.load %arg7[%c0_13, %c0_14] : memref<128x1xf32, #tpu.memory_space<vmem>>, vector<128x1xf32>
    %35 = arith.mulf %33, %34 : vector<128x1xf32>
    %cst_15 = arith.constant dense<0.000000e+00> : vector<128xf32>
    %36 = vector.multi_reduction <add>, %31, %cst_15 [1] : vector<128x128xf32> to vector<128xf32>
    %37 = vector.shape_cast %36 : vector<128xf32> to vector<128x1xf32>
    %38 = arith.addf %35, %37 : vector<128x1xf32>
    %c0_16 = arith.constant 0 : index
    %c0_17 = arith.constant 0 : index
    %39 = vector.load %arg7[%c0_16, %c0_17] : memref<128x1xf32, #tpu.memory_space<vmem>>, vector<128x1xf32>
    tpu.vector_store %arg7[%c0_16, %c0_17], %38 {strides = array<i32>} : memref<128x1xf32, #tpu.memory_space<vmem>>, vector<128x1xf32>,
    %c0_18 = arith.constant 0 : index
    %c0_19 = arith.constant 0 : index
    %40 = vector.load %arg6[%c0_18, %c0_19] : memref<128x1xf32, #tpu.memory_space<vmem>>, vector<128x1xf32>
    tpu.vector_store %arg6[%c0_18, %c0_19], %28 {strides = array<i32>} : memref<128x1xf32, #tpu.memory_space<vmem>>, vector<128x1xf32>,
    %c0_20 = arith.constant 0 : index
    %c0_21 = arith.constant 0 : index
    %41 = vector.load %arg8[%c0_20, %c0_21] : memref<128x1xf32, #tpu.memory_space<vmem>>, vector<128x1xf32>
    %c0_22 = arith.constant 0 : index
    %c0_23 = arith.constant 0 : index
    %42 = vector.load %arg9[%c0_22, %c0_23] : memref<128x1xf32, #tpu.memory_space<vmem>>, vector<128x1xf32>
    %43 = vector.broadcast %42 : vector<128x1xf32> to vector<128x128xf32>
    %44 = arith.cmpf oge, %21, %43 : vector<128x128xf32>
    %45 = arith.extui %44 : vector<128x128xi1> to vector<128x128xi32>
    %46 = arith.sitofp %45 : vector<128x128xi32> to vector<128x128xf32>
    %cst_24 = arith.constant dense<0.000000e+00> : vector<128xf32>
    %47 = vector.multi_reduction <add>, %46, %cst_24 [1] : vector<128x128xf32> to vector<128xf32>
    %48 = vector.shape_cast %47 : vector<128xf32> to vector<128x1xf32>
    %49 = arith.addf %41, %48 : vector<128x1xf32>
    %c0_25 = arith.constant 0 : index
    %c0_26 = arith.constant 0 : index
    %50 = vector.load %arg8[%c0_25, %c0_26] : memref<128x1xf32, #tpu.memory_space<vmem>>, vector<128x1xf32>
    tpu.vector_store %arg8[%c0_25, %c0_26], %49 {strides = array<i32>} : memref<128x1xf32, #tpu.memory_space<vmem>>, vector<128x1xf32>,
    %c0_i32_27 = arith.constant 0 : i32
    %51 = arith.cmpi eq, %arg1, %c0_i32_27 : i32
    %52 = arith.extui %51 : i1 to i32
    %c0_i32_28 = arith.constant 0 : i32
    %53 = arith.cmpi ne, %52, %c0_i32_28 : i32
    scf.if %53 {
      %c0_29 = arith.constant 0 : index
      %c0_30 = arith.constant 0 : index
      %54 = vector.load %arg6[%c0_29, %c0_30] : memref<128x1xf32, #tpu.memory_space<vmem>>, vector<128x1xf32>
      %c0_31 = arith.constant 0 : index
      %c0_32 = arith.constant 0 : index
      %55 = vector.load %arg7[%c0_31, %c0_32] : memref<128x1xf32, #tpu.memory_space<vmem>>, vector<128x1xf32>
      %56 = math.log %55 : vector<128x1xf32>
      %57 = arith.addf %54, %56 : vector<128x1xf32>
      %c0_33 = arith.constant 0 : index
      %c0_34 = arith.constant 0 : index
      %58 = vector.load %arg9[%c0_33, %c0_34] : memref<128x1xf32, #tpu.memory_space<vmem>>, vector<128x1xf32>
      %59 = arith.subf %57, %58 : vector<128x1xf32>
      %c0_35 = arith.constant 0 : index
      %c0_36 = arith.constant 0 : index
      %60 = vector.load %arg4[%c0_35, %c0_36] : memref<128x1xf32, #tpu.memory_space<vmem>>, vector<128x1xf32>
      tpu.vector_store %arg4[%c0_35, %c0_36], %59 {strides = array<i32>} : memref<128x1xf32, #tpu.memory_space<vmem>>, vector<128x1xf32>,
      %c0_37 = arith.constant 0 : index
      %c0_38 = arith.constant 0 : index
      %61 = vector.load %arg8[%c0_37, %c0_38] : memref<128x1xf32, #tpu.memory_space<vmem>>, vector<128x1xf32>
      %cst_39 = arith.constant 1.000000e+00 : f32
      %62 = vector.broadcast %cst_39 : f32 to vector<128x1xf32>
      %63 = arith.divf %62, %61 : vector<128x1xf32>
      %c0_40 = arith.constant 0 : index
      %c0_41 = arith.constant 0 : index
      %64 = vector.load %arg5[%c0_40, %c0_41] : memref<128x1xf32, #tpu.memory_space<vmem>>, vector<128x1xf32>
      tpu.vector_store %arg5[%c0_40, %c0_41], %63 {strides = array<i32>} : memref<128x1xf32, #tpu.memory_space<vmem>>, vector<128x1xf32>,
    } else {
    }
    return
  }
  func.func @transform_0(%arg0: i32, %arg1: i32) -> (i32, i32) {
    %c0_i32 = arith.constant 0 : i32
    %c0_i32_0 = arith.constant 0 : i32
    return %arg0, %c0_i32 : i32, i32
  }
  func.func @transform_1(%arg0: i32, %arg1: i32) -> (i32, i32) {
    %0 = arith.addi %arg0, %arg1 : i32
    %c1_i32 = arith.constant 1 : i32
    %c0_i32 = arith.constant 0 : i32
    %1 = arith.cmpi eq, %c1_i32, %c0_i32 : i32
    %c1_i32_0 = arith.constant 1 : i32
    %2 = arith.select %1, %c1_i32_0, %c1_i32 : i32
    %3 = arith.remsi %0, %2 : i32
    %c0_i32_1 = arith.constant 0 : i32
    %4 = arith.cmpi ne, %3, %c0_i32_1 : i32
    %c0_i32_2 = arith.constant 0 : i32
    %5 = arith.cmpi slt, %3, %c0_i32_2 : i32
    %c0_i32_3 = arith.constant 0 : i32
    %6 = arith.cmpi slt, %2, %c0_i32_3 : i32
    %7 = arith.xori %5, %6 : i1
    %8 = arith.andi %7, %4 : i1
    %9 = arith.addi %3, %2 : i32
    %10 = arith.select %8, %9, %3 : i32
    %c0_i32_4 = arith.constant 0 : i32
    %c0_i32_5 = arith.constant 0 : i32
    return %10, %c0_i32_4 : i32, i32
  }
  func.func @transform_2(%arg0: i32, %arg1: i32) -> (i32, i32) {
    %c0_i32 = arith.constant 0 : i32
    %c0_i32_0 = arith.constant 0 : i32
    return %arg0, %c0_i32 : i32, i32
  }
  func.func @transform_3(%arg0: i32, %arg1: i32) -> (i32, i32) {
    %c0_i32 = arith.constant 0 : i32
    %c0_i32_0 = arith.constant 0 : i32
    return %arg0, %c0_i32 : i32, i32
  }
}

</mosaic_0001>

<bundles_post_ra>
// kernel: softmax_retrieval_loss.1
= control target key start
LH: loop header
LB: loop body
LE: loop exit
PB: predicated region body
PF: predicated region fallthrough
CT: control target
= control target key end

     0   :  { %vm45_vm0 = vcmask 261120   ;;  %v207_v32 = vlaneseq  ;;  %vm311_vm12 = vcmask 7168   ;;  %s2686_s1 = inlined_call_operand.vmem [shape: f32[128,32], index: 1, kind: input, shape index: {}]   ;;  %s2687_s0 = inlined_call_operand.vmem [shape: f32[128,32], index: 0, kind: input, shape index: {}]   ;;  %s2688_s3 = inlined_call_operand.vmem [shape: f32[128,1], index: 3, kind: output, shape index: {1}]   ;;  %s2689_s2 = inlined_call_operand.vmem [shape: f32[128,1], index: 2, kind: output, shape index: {0}]  }
   0x1   :  { %v28_v0 = vld [vmem:[%s2686_s1 + $0x78] sm:$0xff]  ;;  %v27_v1 = vld [vmem:[%s2686_s1 + $0x70] sm:$0xff]  ;;  %v26_v2 = vld [vmem:[%s2686_s1 + $0x68] sm:$0xff] }
   0x2   :  { %1364 = vmatpush.xpose.msk.msra.mxu0 %vm45_vm0, %v28_v0  ;;  %1412 = vmatpush.xpose.msk.msra.mxu1 %vm45_vm0, %v28_v0  ;;  %v25_v3 = vld [vmem:[%s2686_s1 + $0x60] sm:$0xff]  ;;  %v24_v4 = vld [vmem:[%s2686_s1 + $0x58] sm:$0xff]  ;;  %v23_v5 = vld [vmem:[%s2686_s1 + $0x50] sm:$0xff]  ;;  %v1805_v33 = vand.u32 127, %v207_v32  ;;  %v1807_v34 = vshrl.u32 %v207_v32, 7 }
   0x3   :  { %1413 = vmatpush.xpose.msk.msra.mxu2 %vm45_vm0, %v28_v0  ;;  %1414 = vmatpush.xpose.msk.msra.mxu3 %vm45_vm0, %v28_v0  ;;  %v22_v6 = vld [vmem:[%s2686_s1 + $0x48] sm:$0xff]  ;;  %v21_v7 = vld [vmem:[%s2686_s1 + $0x40] sm:$0xff]  ;;  %v20_v8 = vld [vmem:[%s2686_s1 + $0x38] sm:$0xff] }
   0x4   :  { %v19_v9 = vld [vmem:[%s2686_s1 + $0x30] sm:$0xff]  ;;  %v18_v10 = vld [vmem:[%s2686_s1 + $0x28] sm:$0xff]  ;;  %v17_v11 = vld [vmem:[%s2686_s1 + $0x20] sm:$0xff]  ;;  %vm209_vm1 = vcmp.lt.s32.totalorder %v1805_v33, 8  ;;  %vm247_vm2 = vcmp.eq.s32.totalorder %v1807_v34, %v1805_v33  ;;  %v235_v40 = vadd.s32 32, %v1807_v34  ;;  %v243_v46 = vadd.s32 96, %v1807_v34 }
   0x5   :  { %v16_v12 = vld [vmem:[%s2686_s1 + $0x18] sm:$0xff]  ;;  %v15_v13 = vld [vmem:[%s2686_s1 + $0x10] sm:$0xff]  ;;  %v14_v14 = vld [vmem:[%s2686_s1 + $0x8] sm:$0xff]  ;;  %v239_v47 = vadd.s32 64, %v1807_v34  ;;  %v244_v51 = vadd.s32 104, %v1807_v34  ;;  %v236_v60 = vadd.s32 40, %v1807_v34 }
   0x6   :  { %1365 = vmatpush.xpose.msk.msra.mxu0 %vm45_vm0, %v27_v1  ;;  %1415 = vmatpush.xpose.msk.msra.mxu1 %vm45_vm0, %v27_v1  ;;  %v13_v15 = vld [vmem:[%s2686_s1] sm:$0xff]  ;;  %v30_v20 = vld [vmem:[%s2687_s0 + $0x8] sm:$0xff]  ;;  %v35_v24 = vld [vmem:[%s2687_s0 + $0x30] sm:$0xff]  ;;  %vm251_vm3 = vcmp.eq.s32.totalorder %v235_v40, %v1805_v33  ;;  %vm259_vm4 = vcmp.eq.s32.totalorder %v243_v46, %v1805_v33  ;;  %v232_v61 = vadd.s32 8, %v1807_v34  ;;  %v233_v0 = vadd.s32 16, %v1807_v34 }
   0x7   :  { %1416 = vmatpush.xpose.msk.msra.mxu2 %vm45_vm0, %v27_v1  ;;  %1417 = vmatpush.xpose.msk.msra.mxu3 %vm45_vm0, %v27_v1  ;;  %v29_v16 = vld [vmem:[%s2687_s0] sm:$0xff]  ;;  %v34_v21 = vld [vmem:[%s2687_s0 + $0x28] sm:$0xff]  ;;  %v31_v25 = vld [vmem:[%s2687_s0 + $0x10] sm:$0xff]  ;;  %vm255_vm5 = vcmp.eq.s32.totalorder %v239_v47, %v1805_v33  ;;  %vm260_vm6 = vcmp.eq.s32.totalorder %v244_v51, %v1805_v33  ;;  %vm252_vm7 = vcmp.eq.s32.totalorder %v236_v60, %v1805_v33 }
   0x8   :  { %v33_v17 = vld [vmem:[%s2687_s0 + $0x20] sm:$0xff]  ;;  %v38_v22 = vld [vmem:[%s2687_s0 + $0x48] sm:$0xff]  ;;  %v39_v26 = vld [vmem:[%s2687_s0 + $0x50] sm:$0xff]  ;;  %vm248_vm8 = vcmp.eq.s32.totalorder %v232_v61, %v1805_v33  ;;  %vm249_vm9 = vcmp.eq.s32.totalorder %v233_v0, %v1805_v33 }
   0x9   :  { %v37_v18 = vld [vmem:[%s2687_s0 + $0x40] sm:$0xff]  ;;  %v42_v23 = vld [vmem:[%s2687_s0 + $0x68] sm:$0xff]  ;;  %v43_v27 = vld [vmem:[%s2687_s0 + $0x70] sm:$0xff] }
   0xa   :  { %1366 = vmatpush.xpose.msk.msra.mxu0 %vm45_vm0, %v26_v2  ;;  %1418 = vmatpush.xpose.msk.msra.mxu1 %vm45_vm0, %v26_v2  ;;  %v41_v19 = vld [vmem:[%s2687_s0 + $0x60] sm:$0xff]  ;;  %v32_v28 = vld [vmem:[%s2687_s0 + $0x18] sm:$0xff] }
   0xb   :  { %1419 = vmatpush.xpose.msk.msra.mxu2 %vm45_vm0, %v26_v2  ;;  %1420 = vmatpush.xpose.msk.msra.mxu3 %vm45_vm0, %v26_v2  ;;  %v36_v29 = vld [vmem:[%s2687_s0 + $0x38] sm:$0xff] }
   0xc   :  { %v44_v30 = vld [vmem:[%s2687_s0 + $0x78] sm:$0xff] }
   0xd   :  { %v40_v31 = vld [vmem:[%s2687_s0 + $0x58] sm:$0xff] }
   0xe   :  { %1367 = vmatpush.xpose.msk.msra.mxu0 %vm45_vm0, %v25_v3  ;;  %1421 = vmatpush.xpose.msk.msra.mxu1 %vm45_vm0, %v25_v3 }
   0xf   :  { %1422 = vmatpush.xpose.msk.msra.mxu2 %vm45_vm0, %v25_v3  ;;  %1423 = vmatpush.xpose.msk.msra.mxu3 %vm45_vm0, %v25_v3 }
  0x12   :  { %1368 = vmatpush.xpose.msk.msra.mxu0 %vm45_vm0, %v24_v4  ;;  %1424 = vmatpush.xpose.msk.msra.mxu1 %vm45_vm0, %v24_v4 }
  0x13   :  { %1425 = vmatpush.xpose.msk.msra.mxu2 %vm45_vm0, %v24_v4  ;;  %1426 = vmatpush.xpose.msk.msra.mxu3 %vm45_vm0, %v24_v4  ;;  %v240_v4 = vadd.s32 72, %v1807_v34 }
  0x15   :  { %vm256_vm10 = vcmp.eq.s32.totalorder %v240_v4, %v1805_v33 }
  0x16   :  { %1369 = vmatpush.xpose.msk.msra.mxu0 %vm45_vm0, %v23_v5  ;;  %1427 = vmatpush.xpose.msk.msra.mxu1 %vm45_vm0, %v23_v5 }
  0x17   :  { %1428 = vmatpush.xpose.msk.msra.mxu2 %vm45_vm0, %v23_v5  ;;  %1429 = vmatpush.xpose.msk.msra.mxu3 %vm45_vm0, %v23_v5 }
  0x1a   :  { %1370 = vmatpush.xpose.msk.msra.mxu0 %vm45_vm0, %v22_v6  ;;  %1430 = vmatpush.xpose.msk.msra.mxu1 %vm45_vm0, %v22_v6 }
  0x1b   :  { %1431 = vmatpush.xpose.msk.msra.mxu2 %vm45_vm0, %v22_v6  ;;  %1432 = vmatpush.xpose.msk.msra.mxu3 %vm45_vm0, %v22_v6 }
  0x1e   :  { %1371 = vmatpush.xpose.msk.msra.mxu0 %vm45_vm0, %v21_v7  ;;  %1433 = vmatpush.xpose.msk.msra.mxu1 %vm45_vm0, %v21_v7 }
  0x1f   :  { %1434 = vmatpush.xpose.msk.msra.mxu2 %vm45_vm0, %v21_v7  ;;  %1435 = vmatpush.xpose.msk.msra.mxu3 %vm45_vm0, %v21_v7  ;;  %v241_v7 = vadd.s32 80, %v1807_v34 }
  0x21   :  { %vm257_vm11 = vcmp.eq.s32.totalorder %v241_v7, %v1805_v33 }
  0x22   :  { %1372 = vmatpush.xpose.msk.msra.mxu0 %vm45_vm0, %v20_v8  ;;  %1436 = vmatpush.xpose.msk.msra.mxu1 %vm45_vm0, %v20_v8 }
  0x23   :  { %1437 = vmatpush.xpose.msk.msra.mxu2 %vm45_vm0, %v20_v8  ;;  %1438 = vmatpush.xpose.msk.msra.mxu3 %vm45_vm0, %v20_v8 }
  0x26   :  { %1373 = vmatpush.xpose.msk.msra.mxu0 %vm45_vm0, %v19_v9  ;;  %1439 = vmatpush.xpose.msk.msra.mxu1 %vm45_vm0, %v19_v9 }
  0x27   :  { %1440 = vmatpush.xpose.msk.msra.mxu2 %vm45_vm0, %v19_v9  ;;  %1441 = vmatpush.xpose.msk.msra.mxu3 %vm45_vm0, %v19_v9 }
  0x2a   :  { %1374 = vmatpush.xpose.msk.msra.mxu0 %vm45_vm0, %v18_v10  ;;  %1442 = vmatpush.xpose.msk.msra.mxu1 %vm45_vm0, %v18_v10 }
  0x2b   :  { %1443 = vmatpush.xpose.msk.msra.mxu2 %vm45_vm0, %v18_v10  ;;  %1444 = vmatpush.xpose.msk.msra.mxu3 %vm45_vm0, %v18_v10 }
  0x2e   :  { %1375 = vmatpush.xpose.msk.msra.mxu0 %vm45_vm0, %v17_v11  ;;  %1445 = vmatpush.xpose.msk.msra.mxu1 %vm45_vm0, %v17_v11 }
  0x2f   :  { %1446 = vmatpush.xpose.msk.msra.mxu2 %vm45_vm0, %v17_v11  ;;  %1447 = vmatpush.xpose.msk.msra.mxu3 %vm45_vm0, %v17_v11 }
  0x32   :  { %1376 = vmatpush.xpose.msk.msra.mxu0 %vm45_vm0, %v16_v12  ;;  %1448 = vmatpush.xpose.msk.msra.mxu1 %vm45_vm0, %v16_v12 }
  0x33   :  { %1449 = vmatpush.xpose.msk.msra.mxu2 %vm45_vm0, %v16_v12  ;;  %1450 = vmatpush.xpose.msk.msra.mxu3 %vm45_vm0, %v16_v12  ;;  %v245_v12 = vadd.s32 112, %v1807_v34 }
  0x35   :  { %vm261_vm13 = vcmp.eq.s32.totalorder %v245_v12, %v1805_v33 }
  0x36   :  { %1377 = vmatpush.xpose.msk.msra.mxu0 %vm45_vm0, %v15_v13  ;;  %1451 = vmatpush.xpose.msk.msra.mxu1 %vm45_vm0, %v15_v13 }
  0x37   :  { %1452 = vmatpush.xpose.msk.msra.mxu2 %vm45_vm0, %v15_v13  ;;  %1453 = vmatpush.xpose.msk.msra.mxu3 %vm45_vm0, %v15_v13 }
  0x3a   :  { %1378 = vmatpush.xpose.msk.msra.mxu0 %vm45_vm0, %v14_v14  ;;  %1454 = vmatpush.xpose.msk.msra.mxu1 %vm45_vm0, %v14_v14 }
  0x3b   :  { %1455 = vmatpush.xpose.msk.msra.mxu2 %vm45_vm0, %v14_v14  ;;  %1456 = vmatpush.xpose.msk.msra.mxu3 %vm45_vm0, %v14_v14  ;;  %v237_v14 = vadd.s32 48, %v1807_v34 }
  0x3d   :  { %vm253_vm14 = vcmp.eq.s32.totalorder %v237_v14, %v1805_v33 }
  0x3e   :  { %1379 = vmatpush.xpose.msk.msra.mxu0 %vm45_vm0, %v13_v15  ;;  %1457 = vmatpush.xpose.msk.msra.mxu1 %vm45_vm0, %v13_v15 }
  0x3f   :  { %1458 = vmatpush.xpose.msk.msra.mxu2 %vm45_vm0, %v13_v15  ;;  %1459 = vmatpush.xpose.msk.msra.mxu3 %vm45_vm0, %v13_v15 }
  0x41   :  { %1380 = vmatmul.msk.f32.vlgmr.msra.gmra.mxu0 %vm45_vm0, %v29_v16  ;;  %1384 = vmatmul.msk.f32.vlgmr.msra.gmra.mxu1 %vm45_vm0, %v33_v17  ;;  %v1606_v17 = vmov -inf  }
  0x42   :  { %1388 = vmatmul.msk.f32.vlgmr.msra.gmra.mxu2 %vm45_vm0, %v37_v18  ;;  %1392 = vmatmul.msk.f32.vlgmr.msra.gmra.mxu3 %vm45_vm0, %v41_v19  ;;  %332 = vst.msk [vmem:[#allocation2 + $0x20] sm:$0xff] %vm311_vm12, %v1606_v17 }
  0x43   :  { %328 = vst.msk [vmem:[#allocation2] sm:$0xff] %vm311_vm12, %v1606_v17 }
  0x44   :  { %329 = vst.msk [vmem:[#allocation2 + $0x8] sm:$0xff] %vm311_vm12, %v1606_v17 }
  0x45   :  { %330 = vst.msk [vmem:[#allocation2 + $0x10] sm:$0xff] %vm311_vm12, %v1606_v17 }
  0x46   :  { %331 = vst.msk [vmem:[#allocation2 + $0x18] sm:$0xff] %vm311_vm12, %v1606_v17 }
  0x47   :  { %333 = vst.msk [vmem:[#allocation2 + $0x28] sm:$0xff] %vm311_vm12, %v1606_v17 }
  0x48   :  { %334 = vst.msk [vmem:[#allocation2 + $0x30] sm:$0xff] %vm311_vm12, %v1606_v17 }
  0x49   :  { %1381 = vmatmul.msk.f32.gmra.mxu0 %vm45_vm0, %v30_v20  ;;  %1385 = vmatmul.msk.f32.gmra.mxu1 %vm45_vm0, %v34_v21  ;;  %v234_v20 = vadd.s32 24, %v1807_v34  ;;  %335 = vst.msk [vmem:[#allocation2 + $0x38] sm:$0xff] %vm311_vm12, %v1606_v17 }
  0x4a   :  { %1389 = vmatmul.msk.f32.gmra.mxu2 %vm45_vm0, %v38_v22  ;;  %1393 = vmatmul.msk.f32.gmra.mxu3 %vm45_vm0, %v42_v23  ;;  %336 = vst.msk [vmem:[#allocation2 + $0x40] sm:$0xff] %vm311_vm12, %v1606_v17  ;;  %v2002_v40 = vld [vmem:[#allocation2] sm:$0xff] }
  0x4b   :  { %vm250_vm15 = vcmp.eq.s32.totalorder %v234_v20, %v1805_v33  ;;  %337 = vst.msk [vmem:[#allocation2 + $0x48] sm:$0xff] %vm311_vm12, %v1606_v17  ;;  %v2071_v7 = vld [vmem:[#allocation2 + $0x8] sm:$0xff] }
  0x4c   :  { %338 = vst.msk [vmem:[#allocation2 + $0x50] sm:$0xff] %vm311_vm12, %v1606_v17 }
  0x4d   :  { %339 = vst.msk [vmem:[#allocation2 + $0x58] sm:$0xff] %vm311_vm12, %v1606_v17 }
  0x4e   :  { %340 = vst.msk [vmem:[#allocation2 + $0x60] sm:$0xff] %vm311_vm12, %v1606_v17 }
  0x4f   :  { %341 = vst.msk [vmem:[#allocation2 + $0x68] sm:$0xff] %vm311_vm12, %v1606_v17  ;;  %v2095_v20 = vld [vmem:[#allocation2 + $0x30] sm:$0xff] }
  0x50   :  { %342 = vst.msk [vmem:[#allocation2 + $0x70] sm:$0xff] %vm311_vm12, %v1606_v17 }
  0x51   :  { %1386 = vmatmul.msk.f32.gmra.mxu1 %vm45_vm0, %v35_v24  ;;  %1382 = vmatmul.msk.f32.gmra.mxu0 %vm45_vm0, %v31_v25  ;;  %v238_v24 = vadd.s32 56, %v1807_v34  ;;  %v242_v25 = vadd.s32 88, %v1807_v34  ;;  %343 = vst.msk [vmem:[#allocation2 + $0x78] sm:$0xff] %vm311_vm12, %v1606_v17 }
  0x52   :  { %1390 = vmatmul.msk.f32.gmra.mxu2 %vm45_vm0, %v39_v26  ;;  %1394 = vmatmul.msk.f32.gmra.mxu3 %vm45_vm0, %v43_v27  ;;  %v2059_v0 = vld [vmem:[#allocation2 + $0x48] sm:$0xff] }
  0x55   :  { %v2030_v51 = vld [vmem:[#allocation2 + $0x60] sm:$0xff] }
  0x58   :  { %v2193_v17 = vld [vmem:[#allocation2 + $0x78] sm:$0xff] }
  0x59   :  { %1383 = vmatmul.msk.f32.gmra.mxu0 %vm45_vm0, %v32_v28  ;;  %1387 = vmatmul.msk.f32.gmra.mxu1 %vm45_vm0, %v36_v29  ;;  %2702 = vst [vmem:[#allocation10_spill] sm:$0xff] %v2193_v17 }
  0x5a   :  { %1395 = vmatmul.msk.f32.gmra.mxu3 %vm45_vm0, %v44_v30  ;;  %1391 = vmatmul.msk.f32.gmra.mxu2 %vm45_vm0, %v40_v31  ;;  %vm254_vm0 = vcmp.eq.s32.totalorder %v238_v24, %v1805_v33  ;;  %v246_v31 = vadd.s32 120, %v1807_v34  ;;  %v2690_v34 = vmov 0.0  }
  0x5b   :  { %344 = vst.msk [vmem:[#allocation3] sm:$0xff] %vm311_vm12, %v2690_v34 }
  0x5c   :  { %345 = vst.msk [vmem:[#allocation3 + $0x8] sm:$0xff] %vm311_vm12, %v2690_v34 }
  0x5d   :  { %346 = vst.msk [vmem:[#allocation3 + $0x10] sm:$0xff] %vm311_vm12, %v2690_v34 }
  0x5e   :  { %347 = vst.msk [vmem:[#allocation3 + $0x18] sm:$0xff] %vm311_vm12, %v2690_v34 }
  0x5f   :  { %348 = vst.msk [vmem:[#allocation3 + $0x20] sm:$0xff] %vm311_vm12, %v2690_v34 }
  0x60   :  { %349 = vst.msk [vmem:[#allocation3 + $0x28] sm:$0xff] %vm311_vm12, %v2690_v34 }
  0x61   :  { %350 = vst.msk [vmem:[#allocation3 + $0x30] sm:$0xff] %vm311_vm12, %v2690_v34 }
  0x62   :  { %351 = vst.msk [vmem:[#allocation3 + $0x38] sm:$0xff] %vm311_vm12, %v2690_v34 }
  0x63   :  { %352 = vst.msk [vmem:[#allocation3 + $0x40] sm:$0xff] %vm311_vm12, %v2690_v34 }
  0x64   :  { %353 = vst.msk [vmem:[#allocation3 + $0x48] sm:$0xff] %vm311_vm12, %v2690_v34 }
  0x65   :  { %354 = vst.msk [vmem:[#allocation3 + $0x50] sm:$0xff] %vm311_vm12, %v2690_v34 }
  0x66   :  { %355 = vst.msk [vmem:[#allocation3 + $0x58] sm:$0xff] %vm311_vm12, %v2690_v34 }
  0x67   :  { %356 = vst.msk [vmem:[#allocation3 + $0x60] sm:$0xff] %vm311_vm12, %v2690_v34 }
  0x68   :  { %357 = vst.msk [vmem:[#allocation3 + $0x68] sm:$0xff] %vm311_vm12, %v2690_v34 }
  0x69   :  { %358 = vst.msk [vmem:[#allocation3 + $0x70] sm:$0xff] %vm311_vm12, %v2690_v34 }
  0x6a   :  { %359 = vst.msk [vmem:[#allocation3 + $0x78] sm:$0xff] %vm311_vm12, %v2690_v34 }
  0x6b   :  { %360 = vst.msk [vmem:[#allocation4] sm:$0xff] %vm311_vm12, %v2690_v34 }
  0x6c   :  { %361 = vst.msk [vmem:[#allocation4 + $0x8] sm:$0xff] %vm311_vm12, %v2690_v34 }
  0x6d   :  { %362 = vst.msk [vmem:[#allocation4 + $0x10] sm:$0xff] %vm311_vm12, %v2690_v34 }
  0x6e   :  { %363 = vst.msk [vmem:[#allocation4 + $0x18] sm:$0xff] %vm311_vm12, %v2690_v34 }
  0x6f   :  { %364 = vst.msk [vmem:[#allocation4 + $0x20] sm:$0xff] %vm311_vm12, %v2690_v34 }
  0x70   :  { %365 = vst.msk [vmem:[#allocation4 + $0x28] sm:$0xff] %vm311_vm12, %v2690_v34 }
  0x71   :  { %366 = vst.msk [vmem:[#allocation4 + $0x30] sm:$0xff] %vm311_vm12, %v2690_v34 }
  0x72   :  { %367 = vst.msk [vmem:[#allocation4 + $0x38] sm:$0xff] %vm311_vm12, %v2690_v34 }
  0x73   :  { %368 = vst.msk [vmem:[#allocation4 + $0x40] sm:$0xff] %vm311_vm12, %v2690_v34 }
  0x74   :  { %369 = vst.msk [vmem:[#allocation4 + $0x48] sm:$0xff] %vm311_vm12, %v2690_v34 }
  0x75   :  { %370 = vst.msk [vmem:[#allocation4 + $0x50] sm:$0xff] %vm311_vm12, %v2690_v34 }
  0x76   :  { %371 = vst.msk [vmem:[#allocation4 + $0x58] sm:$0xff] %vm311_vm12, %v2690_v34 }
  0x77   :  { %372 = vst.msk [vmem:[#allocation4 + $0x60] sm:$0xff] %vm311_vm12, %v2690_v34 }
  0x78   :  { %373 = vst.msk [vmem:[#allocation4 + $0x68] sm:$0xff] %vm311_vm12, %v2690_v34 }
  0x79   :  { %374 = vst.msk [vmem:[#allocation4 + $0x70] sm:$0xff] %vm311_vm12, %v2690_v34 }
  0x7a   :  { %375 = vst.msk [vmem:[#allocation4 + $0x78] sm:$0xff] %vm311_vm12, %v2690_v34 }
  0xbe   :  { %v159_v35 = vpop.f32.mrf.mxu0  ;;  %v171_v36 = vpop.f32.mrf.mxu1 }
  0xbf   :  { %v1814_v37 = vsel %vm209_vm1, %v159_v35, -inf  ;;  %v1818_v38 = vsel %vm209_vm1, %v171_v36, -inf }
  0xc0   :  { %400 = vmax.xlane.f32.xlu2 %v1818_v38  ;;  %392 = vmax.xlane.f32.xlu1 %v1814_v37  ;;  %v263_v39 = vsel %vm247_vm2, %v1814_v37, 0.0  ;;  %v267_v45 = vsel %vm251_vm3, %v1818_v38, 0.0  ;;  %vm258_vm2 = vcmp.eq.s32.totalorder %v242_v25, %v1805_v33  ;;  %vm262_vm3 = vcmp.eq.s32.totalorder %v246_v31, %v1805_v33  ;;  %v2000_v33 = vld [vmem:[#allocation2 + $0x20] sm:$0xff]  ;;  %v2115_v31 = vld [vmem:[#allocation2 + $0x68] sm:$0xff] }
  0xc1   :  { %279 = vadd.xlane.f32.xlu0 %v263_v39  ;;  %v1607_v39 = vmov 0  }
  0xc2   :  { %1463 = vset.pattern.permute.xlu2 %v1607_v39  ;;  %1464 = vset.pattern.permute.xlu0 %v1607_v39 }
  0xc3   :  { %1465 = vset.pattern.permute.xlu1 %v1607_v39 }
  0xc5   :  { %v183_v41 = vpop.f32.mrf.mxu2  ;;  %v195_v42 = vpop.f32.mrf.mxu3 }
  0xc6   :  { %v1827_v43 = vsel %vm209_vm1, %v183_v41, -inf  ;;  %v1831_v44 = vsel %vm209_vm1, %v195_v42, -inf  ;;  %v174_v54 = vpop.f32.mrf.mxu1  ;;  %v162_v56 = vpop.f32.mrf.mxu0 }
  0xc7   :  { %v275_v50 = vsel %vm259_vm4, %v1831_v44, 0.0  ;;  %v271_v52 = vsel %vm255_vm5, %v1827_v43, 0.0  ;;  %v1855_v57 = vsel %vm209_vm1, %v162_v56, -inf  ;;  %v1860_v59 = vsel %vm209_vm1, %v174_v54, -inf }
  0xc8   :  { %287 = vadd.xlane.f32.xlu2 %v267_v45  ;;  %416 = vmax.xlane.f32.xlu1 %v1831_v44  ;;  %v268_v1 = vsel %vm252_vm7, %v1860_v59, 0.0  ;;  %v264_v3 = vsel %vm248_vm8, %v1855_v57, 0.0 }
  0xc9   :  { %408 = vmax.xlane.f32.xlu0 %v1827_v43 }
  0xcd   :  { %v186_v48 = vpop.f32.mrf.mxu2  ;;  %v198_v53 = vpop.f32.mrf.mxu3 }
  0xce   :  { %v1842_v49 = vsel %vm209_vm1, %v186_v48, -inf  ;;  %v1850_v55 = vsel %vm209_vm1, %v198_v53, -inf  ;;  %v177_v62 = vpop.f32.mrf.mxu1  ;;  %v165_v2 = vpop.f32.mrf.mxu0 }
  0xcf   :  { %v276_v58 = vsel %vm260_vm6, %v1850_v55, 0.0  ;;  %v1869_v63 = vsel %vm209_vm1, %v177_v62, -inf  ;;  %v1879_v5 = vsel %vm209_vm1, %v165_v2, -inf  ;;  %v272_v9 = vsel %vm256_vm10, %v1842_v49, 0.0 }
  0xd0   :  { %295 = vadd.xlane.f32.xlu2 %v271_v52  ;;  %410 = vmax.xlane.f32.xlu1 %v1842_v49  ;;  %v265_v6 = vsel %vm249_vm9, %v1879_v5, 0.0  ;;  %v269_v21 = vsel %vm253_vm14, %v1869_v63, 0.0  ;;  %v2034_v52 = vld [vmem:[#allocation2 + $0x40] sm:$0xff] }
  0xd1   :  { %303 = vadd.xlane.f32.xlu0 %v275_v50 }
  0xd5   :  { %v189_v8 = vpop.f32.mrf.mxu2  ;;  %v201_v13 = vpop.f32.mrf.mxu3 }
  0xd6   :  { %v1889_v10 = vsel %vm209_vm1, %v189_v8, -inf  ;;  %v168_v15 = vpop.f32.mrf.mxu0  ;;  %v1899_v16 = vsel %vm209_vm1, %v201_v13, -inf  ;;  %v180_v22 = vpop.f32.mrf.mxu1  ;;  %v2073_v8 = vld [vmem:[#allocation2 + $0x28] sm:$0xff] }
  0xd7   :  { %v273_v11 = vsel %vm257_vm11, %v1889_v10, 0.0  ;;  %v1907_v18 = vsel %vm209_vm1, %v168_v15, -inf  ;;  %v277_v19 = vsel %vm261_vm13, %v1899_v16, 0.0  ;;  %v1930_v26 = vsel %vm209_vm1, %v180_v22, -inf }
  0xd8   :  { %305 = vadd.xlane.f32.xlu1 %v276_v58  ;;  %394 = vmax.xlane.f32.xlu2 %v1855_v57  ;;  %v266_v23 = vsel %vm250_vm15, %v1907_v18, 0.0  ;;  %v270_v29 = vsel %vm254_vm0, %v1930_v26, 0.0 }
  0xd9   :  { %402 = vmax.xlane.f32.xlu0 %v1860_v59 }
  0xdd   :  { %v192_v27 = vpop.f32.mrf.mxu2  ;;  %v204_v32 = vpop.f32.mrf.mxu3 }
  0xde   :  { %v1941_v28 = vsel %vm209_vm1, %v192_v27, -inf  ;;  %v1950_v35 = vsel %vm209_vm1, %v204_v32, -inf }
  0xdf   :  { %v274_v30 = vsel %vm258_vm2, %v1941_v28, 0.0  ;;  %v278_v36 = vsel %vm262_vm3, %v1950_v35, 0.0 }
  0xe0   :  { %404 = vmax.xlane.f32.xlu1 %v1869_v63  ;;  %289 = vadd.xlane.f32.xlu2 %v268_v1 }
  0xe1   :  { %281 = vadd.xlane.f32.xlu0 %v264_v3 }
  0xe8   :  { %283 = vadd.xlane.f32.xlu1 %v265_v6  ;;  %418 = vmax.xlane.f32.xlu2 %v1850_v55 }
  0xe9   :  { %297 = vadd.xlane.f32.xlu0 %v272_v9 }
  0xf0   :  { %299 = vadd.xlane.f32.xlu1 %v273_v11  ;;  %412 = vmax.xlane.f32.xlu2 %v1889_v10 }
  0xf1   :  { %396 = vmax.xlane.f32.xlu0 %v1879_v5 }
  0xf8   :  { %398 = vmax.xlane.f32.xlu1 %v1907_v18  ;;  %307 = vadd.xlane.f32.xlu2 %v277_v19 }
  0xf9   :  { %291 = vadd.xlane.f32.xlu0 %v269_v21 }
 0x100   :  { %285 = vadd.xlane.f32.xlu1 %v266_v23  ;;  %406 = vmax.xlane.f32.xlu2 %v1930_v26 }
 0x101   :  { %420 = vmax.xlane.f32.xlu0 %v1899_v16 }
 0x108   :  { %293 = vadd.xlane.f32.xlu1 %v270_v29  ;;  %301 = vadd.xlane.f32.xlu2 %v274_v30 }
 0x109   :  { %414 = vmax.xlane.f32.xlu0 %v1941_v28 }
 0x110   :  { %422 = vmax.xlane.f32.xlu1 %v1950_v35 }
 0x111   :  { %309 = vadd.xlane.f32.xlu0 %v278_v36 }
 0x133   :  { %v401_v41 = vpop.xlane.xlu2 %400  ;;  %v393_v42 = vpop.xlane.xlu1 %392 }
 0x134   :  { %v2011_v45 = vmax.f32 %v2000_v33, %v401_v41  ;;  %v2014_v46 = vmax.f32 %v2002_v40, %v393_v42  ;;  %v280_v47 = vpop.xlane.xlu0 %279 }
 0x135   :  { %312 = vst.msk [vmem:[#allocation5] sm:$0xff] %vm311_vm12, %v280_v47 }
 0x136   :  { %717 = vst.msk [vmem:[#allocation2 + $0x20] sm:$0xff] %vm311_vm12, %v2011_v45  ;;  %442 = vperm.xlu2 %1463, %v2014_v46  }
 0x137   :  { %713 = vst.msk [vmem:[#allocation2] sm:$0xff] %vm311_vm12, %v2014_v46 }
 0x13b   :  { %v288_v53 = vpop.xlane.xlu2 %287  ;;  %v417_v54 = vpop.xlane.xlu1 %416 }
 0x13c   :  { %316 = vst.msk [vmem:[#allocation5 + $0x20] sm:$0xff] %vm311_vm12, %v288_v53  ;;  %v2042_v56 = vmax.f32 %v2030_v51, %v417_v54  ;;  %v409_v58 = vpop.xlane.xlu0 %408  ;;  %v2079_v14 = vld [vmem:[#allocation5] sm:$0xff]  ;;  %v2128_v53 = vld [vmem:[#allocation2 + $0x50] sm:$0xff] }
 0x13d   :  { %v2045_v60 = vmax.f32 %v2034_v52, %v409_v58  ;;  %v2130_v54 = vld [vmem:[#allocation2 + $0x10] sm:$0xff] }
 0x13e   :  { %725 = vst.msk [vmem:[#allocation2 + $0x60] sm:$0xff] %vm311_vm12, %v2042_v56  ;;  %462 = vperm.xlu2 %1463, %v2011_v45  }
 0x13f   :  { %721 = vst.msk [vmem:[#allocation2 + $0x40] sm:$0xff] %vm311_vm12, %v2045_v60  ;;  %482 = vperm.xlu0 %1464, %v2045_v60  }
 0x143   :  { %v296_v1 = vpop.xlane.xlu2 %295  ;;  %v411_v2 = vpop.xlane.xlu1 %410  ;;  %v2101_v25 = vld [vmem:[#allocation5 + $0x20] sm:$0xff] }
 0x144   :  { %320 = vst.msk [vmem:[#allocation5 + $0x40] sm:$0xff] %vm311_vm12, %v296_v1  ;;  %v2063_v3 = vmax.f32 %v2059_v0, %v411_v2  ;;  %v304_v4 = vpop.xlane.xlu0 %303 }
 0x145   :  { %324 = vst.msk [vmem:[#allocation5 + $0x60] sm:$0xff] %vm311_vm12, %v304_v4 }
 0x146   :  { %722 = vst.msk [vmem:[#allocation2 + $0x48] sm:$0xff] %vm311_vm12, %v2063_v3  ;;  %502 = vperm.xlu2 %1463, %v2042_v56  }
 0x14b   :  { %v306_v9 = vpop.xlane.xlu1 %305  ;;  %v395_v11 = vpop.xlane.xlu2 %394  ;;  %v2106_v29 = vld [vmem:[#allocation5 + $0x40] sm:$0xff] }
 0x14c   :  { %325 = vst.msk [vmem:[#allocation5 + $0x68] sm:$0xff] %vm311_vm12, %v306_v9  ;;  %v2077_v12 = vmax.f32 %v2071_v7, %v395_v11  ;;  %v403_v13 = vpop.xlane.xlu0 %402  ;;  %v2103_v27 = vld [vmem:[#allocation5 + $0x60] sm:$0xff] }
 0x14d   :  { %v2082_v15 = vmax.f32 %v2073_v8, %v403_v13 }
 0x14e   :  { %714 = vst.msk [vmem:[#allocation2 + $0x8] sm:$0xff] %vm311_vm12, %v2077_v12  ;;  %763 = vperm.xlu2 %1463, %v2079_v14   ;;  %447 = vperm.xlu0 %1464, %v2077_v12  }
 0x14f   :  { %718 = vst.msk [vmem:[#allocation2 + $0x28] sm:$0xff] %vm311_vm12, %v2082_v15  ;;  %467 = vperm.xlu1 %1465, %v2082_v15  }
 0x153   :  { %v405_v21 = vpop.xlane.xlu1 %404  ;;  %v290_v22 = vpop.xlane.xlu2 %289 }
 0x154   :  { %v2098_v23 = vmax.f32 %v2095_v20, %v405_v21  ;;  %317 = vst.msk [vmem:[#allocation5 + $0x28] sm:$0xff] %vm311_vm12, %v290_v22  ;;  %v282_v24 = vpop.xlane.xlu0 %281 }
 0x155   :  { %313 = vst.msk [vmem:[#allocation5 + $0x8] sm:$0xff] %vm311_vm12, %v282_v24  ;;  %v2148_v24 = vld [vmem:[#allocation2 + $0x18] sm:$0xff] }
 0x156   :  { %719 = vst.msk [vmem:[#allocation2 + $0x30] sm:$0xff] %vm311_vm12, %v2098_v23  ;;  %783 = vperm.xlu2 %1463, %v2101_v25   ;;  %823 = vperm.xlu0 %1464, %v2103_v27  }
 0x157   :  { %803 = vperm.xlu1 %1465, %v2106_v29  }
 0x15b   :  { %v284_v32 = vpop.xlane.xlu1 %283  ;;  %v419_v36 = vpop.xlane.xlu2 %418  ;;  %v1041_v13 = vld [vmem:[#allocation5 + $0x28] sm:$0xff] }
 0x15c   :  { %v1037_v39 = vld [vmem:[#allocation5 + $0x8] sm:$0xff]  ;;  %314 = vst.msk [vmem:[#allocation5 + $0x10] sm:$0xff] %vm311_vm12, %v284_v32  ;;  %v2119_v41 = vmax.f32 %v2115_v31, %v419_v36  ;;  %v298_v42 = vpop.xlane.xlu0 %297 }
 0x15d   :  { %321 = vst.msk [vmem:[#allocation5 + $0x48] sm:$0xff] %vm311_vm12, %v298_v42 }
 0x15e   :  { %726 = vst.msk [vmem:[#allocation2 + $0x68] sm:$0xff] %vm311_vm12, %v2119_v41  ;;  %487 = vperm.xlu2 %1463, %v2063_v3   ;;  %768 = vperm.xlu0 %1464, %v1037_v39  }
 0x15f   :  { %507 = vperm.xlu1 %1465, %v2119_v41  }
 0x163   :  { %v300_v58 = vpop.xlane.xlu1 %299  ;;  %v413_v1 = vpop.xlane.xlu2 %412 }
 0x164   :  { %v1045_v2 = vld [vmem:[#allocation5 + $0x48] sm:$0xff]  ;;  %322 = vst.msk [vmem:[#allocation5 + $0x50] sm:$0xff] %vm311_vm12, %v300_v58  ;;  %v397_v4 = vpop.xlane.xlu0 %396  ;;  %v2134_v9 = vmax.f32 %v2128_v53, %v413_v1  ;;  %v1038_v1 = vld [vmem:[#allocation5 + $0x10] sm:$0xff] }
 0x165   :  { %v2137_v11 = vmax.f32 %v2130_v54, %v397_v4  ;;  %v1049_v58 = vld [vmem:[#allocation5 + $0x68] sm:$0xff]  ;;  %v2162_v4 = vld [vmem:[#allocation2 + $0x70] sm:$0xff] }
 0x166   :  { %472 = vperm.xlu2 %1463, %v2098_v23   ;;  %808 = vperm.xlu0 %1464, %v1045_v2   ;;  %723 = vst.msk [vmem:[#allocation2 + $0x50] sm:$0xff] %vm311_vm12, %v2134_v9  ;;  %v2160_v2 = vld [vmem:[#allocation2 + $0x38] sm:$0xff] }
 0x167   :  { %715 = vst.msk [vmem:[#allocation2 + $0x10] sm:$0xff] %vm311_vm12, %v2137_v11  ;;  %788 = vperm.xlu1 %1465, %v1041_v13  }
 0x168   :  { %2698 = vst [vmem:[#allocation6_spill] sm:$0xff] %v2160_v2 }
 0x16b   :  { %v399_v32 = vpop.xlane.xlu1 %398  ;;  %v308_v36 = vpop.xlane.xlu2 %307 }
 0x16c   :  { %v2151_v39 = vmax.f32 %v2148_v24, %v399_v32  ;;  %v292_v42 = vpop.xlane.xlu0 %291  ;;  %326 = vst.msk [vmem:[#allocation5 + $0x70] sm:$0xff] %vm311_vm12, %v308_v36 }
 0x16d   :  { %318 = vst.msk [vmem:[#allocation5 + $0x30] sm:$0xff] %vm311_vm12, %v292_v42 }
 0x16e   :  { %716 = vst.msk [vmem:[#allocation2 + $0x18] sm:$0xff] %vm311_vm12, %v2151_v39  ;;  %828 = vperm.xlu2 %1463, %v1049_v58  }
 0x16f   :  { %452 = vperm.xlu1 %1465, %v2137_v11  }
 0x173   :  { %v286_v13 = vpop.xlane.xlu1 %285  ;;  %v407_v32 = vpop.xlane.xlu2 %406 }
 0x174   :  { %315 = vst.msk [vmem:[#allocation5 + $0x18] sm:$0xff] %vm311_vm12, %v286_v13  ;;  %v421_v36 = vpop.xlane.xlu0 %420  ;;  %v2166_v42 = vmax.f32 %v2160_v2, %v407_v32  ;;  %v2182_v13 = vld [vmem:[#allocation2 + $0x58] sm:$0xff]  ;;  %v1046_v32 = vld [vmem:[#allocation5 + $0x50] sm:$0xff] }
 0x175   :  { %v2169_v21 = vmax.f32 %v2162_v4, %v421_v36  ;;  %2700 = vst [vmem:[#allocation8_spill] sm:$0xff] %v2182_v13  ;;  %v1042_v19 = vld [vmem:[#allocation5 + $0x30] sm:$0xff] }
 0x176   :  { %2699 = vst [vmem:[#allocation7_spill] sm:$0xff] %v2166_v42  ;;  %457 = vperm.xlu2 %1463, %v2151_v39  }
 0x177   :  { %720 = vst.msk [vmem:[#allocation2 + $0x38] sm:$0xff] %vm311_vm12, %v2166_v42  ;;  %512 = vperm.xlu0 %1464, %v2169_v21   ;;  %492 = vperm.xlu1 %1465, %v2134_v9  }
 0x178   :  { %727 = vst.msk [vmem:[#allocation2 + $0x70] sm:$0xff] %vm311_vm12, %v2169_v21 }
 0x17b   :  { %v294_v36 = vpop.xlane.xlu1 %293  ;;  %v302_v22 = vpop.xlane.xlu2 %301 }
 0x17c   :  { %319 = vst.msk [vmem:[#allocation5 + $0x38] sm:$0xff] %vm311_vm12, %v294_v36  ;;  %v415_v58 = vpop.xlane.xlu0 %414 }
 0x17d   :  { %v2186_v30 = vmax.f32 %v2182_v13, %v415_v58  ;;  %323 = vst.msk [vmem:[#allocation5 + $0x58] sm:$0xff] %vm311_vm12, %v302_v22 }
 0x17e   :  { %813 = vperm.xlu2 %1463, %v1046_v32   ;;  %v1050_v32 = vld [vmem:[#allocation5 + $0x70] sm:$0xff] }
 0x17f   :  { %2701 = vst [vmem:[#allocation9_spill] sm:$0xff] %v2186_v30  ;;  %793 = vperm.xlu0 %1464, %v1042_v19   ;;  %773 = vperm.xlu1 %1465, %v1038_v1   ;;  %v1039_v1 = vld [vmem:[#allocation5 + $0x18] sm:$0xff] }
 0x180   :  { %724 = vst.msk [vmem:[#allocation2 + $0x58] sm:$0xff] %vm311_vm12, %v2186_v30 }
 0x183   :  { %v423_v36 = vpop.xlane.xlu1 %422  ;;  %v1043_v19 = vld [vmem:[#allocation5 + $0x38] sm:$0xff] }
 0x184   :  { %v2196_v6 = vmax.f32 %v2193_v17, %v423_v36  ;;  %v310_v58 = vpop.xlane.xlu0 %309 }
 0x185   :  { %327 = vst.msk [vmem:[#allocation5 + $0x78] sm:$0xff] %vm311_vm12, %v310_v58  ;;  %v1047_v58 = vld [vmem:[#allocation5 + $0x58] sm:$0xff] }
 0x186   :  { %2703 = vst [vmem:[#allocation11_spill] sm:$0xff] %v2196_v6  ;;  %517 = vperm.xlu2 %1463, %v2196_v6  }
 0x187   :  { %728 = vst.msk [vmem:[#allocation2 + $0x78] sm:$0xff] %vm311_vm12, %v2196_v6  ;;  %497 = vperm.xlu0 %1464, %v2186_v30   ;;  %477 = vperm.xlu1 %1465, %v2166_v42   ;;  %v2704_v30 = vmov 0.0  }
 0x18c   :  { %v1051_v47 = vld [vmem:[#allocation5 + $0x78] sm:$0xff] }
 0x18e   :  { %798 = vperm.xlu2 %1463, %v1043_v19  }
 0x18f   :  { %833 = vperm.xlu1 %1465, %v1050_v32   ;;  %778 = vperm.xlu0 %1464, %v1039_v1  }
 0x190   :  { %v443_v36 = vpop.permute.xlu2 %442 }
 0x191   :  { %v520_v32 = vsub.f32 %v1814_v37, %v443_v36 }
 0x197   :  { %818 = vperm.xlu1 %1465, %v1047_v58   ;;  %838 = vperm.xlu0 %1464, %v1051_v47   ;;  %v536_v58 = vmul.f32 1.442695, %v520_v32 }
 0x198   :  { %v463_v22 = vpop.permute.xlu2 %462 }
 0x199   :  { %v524_v50 = vsub.f32 %v1818_v38, %v463_v22 }
 0x19b   :  { %v544_v34 = vmul.f32 1.442695, %v524_v50 }
 0x19d   :  { %1466 = vpow2.f32 %v544_v34 }
 0x19e   :  { %1468 = vpow2.f32 %v536_v58 }
 0x1a0   :  { %v503_v62 = vpop.permute.xlu2 %502 }
 0x1a1   :  { %v532_v50 = vsub.f32 %v1831_v44, %v503_v62 }
 0x1a3   :  { %v1467_v47 = vpop.eup %1466 }
 0x1a4   :  { %v1469_v6 = vpop.eup %1468 }
 0x1a8   :  { %v764_v61 = vpop.permute.xlu2 %763 }
 0x1a9   :  { %vm841_vm1 = vcmp.ge.f32.partialorder %v1814_v37, %v764_v61 }
 0x1aa   :  { %v1396_v13 = vsel %vm841_vm1, 1.0, %v2704_v30 }
 0x1b0   :  { %v784_v48 = vpop.permute.xlu2 %783 }
 0x1b1   :  { %v483_v19 = vpop.permute.xlu0 %482  ;;  %vm845_vm4 = vcmp.ge.f32.partialorder %v1818_v38, %v784_v48 }
 0x1b2   :  { %v1400_v22 = vsel %vm845_vm4, 1.0, %v2704_v30  ;;  %v528_v34 = vsub.f32 %v1827_v43, %v483_v19 }
 0x1b4   :  { %v552_v37 = vmul.f32 1.442695, %v528_v34 }
 0x1b7   :  { %889 = vadd.xlane.f32.xlu2 %v1396_v13  ;;  %v560_v13 = vmul.f32 1.442695, %v532_v50 }
 0x1b8   :  { %v488_v1 = vpop.permute.xlu2 %487 }
 0x1b9   :  { %1470 = vpow2.f32 %v560_v13 }
 0x1ba   :  { %1472 = vpow2.f32 %v552_v37 }
 0x1bf   :  { %656 = vadd.xlane.f32.xlu2 %v1467_v47  ;;  %v1471_v19 = vpop.eup %1470 }
 0x1c0   :  { %v473_v42 = vpop.permute.xlu2 %472  ;;  %v448_v2 = vpop.permute.xlu0 %447 }
 0x1c1   :  { %897 = vadd.xlane.f32.xlu1 %v1400_v22  ;;  %v468_v61 = vpop.permute.xlu1 %467 }
 0x1c8   :  { %v824_v17 = vpop.permute.xlu0 %823  ;;  %v2215_v48 = vpop.permute.xlu2 %828 }
 0x1c9   :  { %vm853_vm5 = vcmp.ge.f32.partialorder %v1831_v44, %v824_v17  ;;  %648 = vadd.xlane.f32.xlu1 %v1469_v6  ;;  %v804_v38 = vpop.permute.xlu1 %803  ;;  %v529_v44 = vsub.f32 %v1842_v49, %v488_v1  ;;  %v1473_v6 = vpop.eup %1472  ;;  %vm854_vm2 = vcmp.ge.f32.partialorder %v1850_v55, %v2215_v48 }
 0x1ca   :  { %vm849_vm6 = vcmp.ge.f32.partialorder %v1827_v43, %v804_v38  ;;  %v1408_v36 = vsel %vm853_vm5, 1.0, %v2704_v30  ;;  %v521_v43 = vsub.f32 %v1855_v57, %v448_v2  ;;  %v526_v38 = vsub.f32 %v1869_v63, %v473_v42 }
 0x1cb   :  { %913 = vadd.xlane.f32.xlu2 %v1408_v36  ;;  %v1404_v62 = vsel %vm849_vm6, 1.0, %v2704_v30  ;;  %v554_v22 = vmul.f32 1.442695, %v529_v44  ;;  %v525_v2 = vsub.f32 %v1860_v59, %v468_v61 }
 0x1cc   :  { %905 = vadd.xlane.f32.xlu0 %v1404_v62  ;;  %v538_v37 = vmul.f32 1.442695, %v521_v43  ;;  %v548_v62 = vmul.f32 1.442695, %v526_v38 }
 0x1cd   :  { %1474 = vpow2.f32 %v554_v22 }
 0x1d0   :  { %v769_v32 = vpop.permute.xlu0 %768  ;;  %v2221_v17 = vpop.permute.xlu2 %457 }
 0x1d1   :  { %672 = vadd.xlane.f32.xlu1 %v1471_v19  ;;  %v508_v47 = vpop.permute.xlu1 %507  ;;  %vm842_vm7 = vcmp.ge.f32.partialorder %v1855_v57, %v769_v32  ;;  %v546_v32 = vmul.f32 1.442695, %v525_v2 }
 0x1d2   :  { %v533_v58 = vsub.f32 %v1850_v55, %v508_v47  ;;  %v1397_v13 = vsel %vm842_vm7, 1.0, %v2704_v30  ;;  %v2705_v55 = vsub.f32 %v2000_v33, %v2011_v45  ;;  %v2707_v45 = vsub.f32 %v2030_v51, %v2042_v56 }
 0x1d4   :  { %664 = vadd.xlane.f32.xlu0 %v1473_v6  ;;  %v562_v50 = vmul.f32 1.442695, %v533_v58  ;;  %v592_v48 = vmul.f32 1.442695, %v2705_v55  ;;  %v2709_v55 = vsub.f32 %v2059_v0, %v2063_v3 }
 0x1d6   :  { %1476 = vpow2.f32 %v562_v50 }
 0x1d7   :  { %1478 = vpow2.f32 %v538_v37 }
 0x1d8   :  { %v809_v34 = vpop.permute.xlu0 %808  ;;  %v814_v19 = vpop.permute.xlu2 %813  ;;  %1480 = vpow2.f32 %v548_v62 }
 0x1d9   :  { %vm850_vm8 = vcmp.ge.f32.partialorder %v1842_v49, %v809_v34  ;;  %891 = vadd.xlane.f32.xlu1 %v1397_v13  ;;  %v789_v1 = vpop.permute.xlu1 %788  ;;  %v1475_v49 = vpop.eup %1474  ;;  %1482 = vpow2.f32 %v546_v32  ;;  %vm851_vm10 = vcmp.ge.f32.partialorder %v1889_v10, %v814_v19 }
 0x1da   :  { %vm846_vm9 = vcmp.ge.f32.partialorder %v1860_v59, %v789_v1  ;;  %v1405_v36 = vsel %vm850_vm8, 1.0, %v2704_v30  ;;  %v1406_v13 = vsel %vm851_vm10, 1.0, %v2704_v30 }
 0x1db   :  { %907 = vadd.xlane.f32.xlu2 %v1405_v36  ;;  %v1401_v57 = vsel %vm846_vm9, 1.0, %v2704_v30  ;;  %v523_v36 = vsub.f32 %v1907_v18, %v2221_v17 }
 0x1dc   :  { %899 = vadd.xlane.f32.xlu0 %v1401_v57  ;;  %v1477_v44 = vpop.eup %1476 }
 0x1dd   :  { %v1479_v42 = vpop.eup %1478 }
 0x1de   :  { %v1481_v6 = vpop.eup %1480 }
 0x1df   :  { %v1483_v50 = vpop.eup %1482 }
 0x1e0   :  { %v518_v58 = vpop.permute.xlu2 %517 }
 0x1e1   :  { %666 = vadd.xlane.f32.xlu1 %v1475_v49  ;;  %v453_v47 = vpop.permute.xlu1 %452  ;;  %v542_v49 = vmul.f32 1.442695, %v523_v36 }
 0x1e2   :  { %v522_v59 = vsub.f32 %v1879_v5, %v453_v47 }
 0x1e3   :  { %674 = vadd.xlane.f32.xlu2 %v1477_v44 }
 0x1e4   :  { %650 = vadd.xlane.f32.xlu0 %v1479_v42  ;;  %v540_v34 = vmul.f32 1.442695, %v522_v59 }
 0x1e6   :  { %1484 = vpow2.f32 %v540_v34 }
 0x1e8   :  { %v799_v57 = vpop.permute.xlu2 %798 }
 0x1e9   :  { %v513_v43 = vpop.permute.xlu0 %512  ;;  %660 = vadd.xlane.f32.xlu1 %v1481_v6  ;;  %v493_v22 = vpop.permute.xlu1 %492  ;;  %vm848_vm14 = vcmp.ge.f32.partialorder %v1930_v26, %v799_v57 }
 0x1ea   :  { %v534_v61 = vsub.f32 %v1899_v16, %v513_v43  ;;  %v530_v19 = vsub.f32 %v1889_v10, %v493_v22  ;;  %v1403_v17 = vsel %vm848_vm14, 1.0, %v2704_v30 }
 0x1ec   :  { %658 = vadd.xlane.f32.xlu0 %v1483_v50  ;;  %v564_v37 = vmul.f32 1.442695, %v534_v61  ;;  %v556_v32 = vmul.f32 1.442695, %v530_v19  ;;  %v1485_v47 = vpop.eup %1484 }
 0x1ee   :  { %1486 = vpow2.f32 %v564_v37 }
 0x1ef   :  { %1488 = vpow2.f32 %v542_v49 }
 0x1f0   :  { %1490 = vpow2.f32 %v556_v32  ;;  %v620_v32 = vld [vmem:[#allocation3 + $0x20] sm:$0xff] }
 0x1f1   :  { %v794_v1 = vpop.permute.xlu0 %793  ;;  %909 = vadd.xlane.f32.xlu1 %v1406_v13  ;;  %v774_v38 = vpop.permute.xlu1 %773 }
 0x1f2   :  { %vm847_vm11 = vcmp.ge.f32.partialorder %v1869_v63, %v794_v1  ;;  %vm843_vm13 = vcmp.ge.f32.partialorder %v1879_v5, %v774_v38  ;;  %v535_v5 = vsub.f32 %v1950_v35, %v518_v58 }
 0x1f3   :  { %v1402_v2 = vsel %vm847_vm11, 1.0, %v2704_v30  ;;  %v1398_v62 = vsel %vm843_vm13, 1.0, %v2704_v30 }
 0x1f4   :  { %901 = vadd.xlane.f32.xlu2 %v1402_v2  ;;  %893 = vadd.xlane.f32.xlu0 %v1398_v62  ;;  %v1487_v44 = vpop.eup %1486  ;;  %v566_v6 = vmul.f32 1.442695, %v535_v5  ;;  %v729_v62 = vld [vmem:[#allocation4] sm:$0xff] }
 0x1f5   :  { %v1489_v43 = vpop.eup %1488  ;;  %v733_v5 = vld [vmem:[#allocation4 + $0x20] sm:$0xff] }
 0x1f6   :  { %1492 = vpow2.f32 %v566_v6  ;;  %v1491_v10 = vpop.eup %1490 }
 0x1f9   :  { %903 = vadd.xlane.f32.xlu1 %v1403_v17  ;;  %v478_v63 = vpop.permute.xlu1 %477  ;;  %v498_v42 = vpop.permute.xlu0 %497 }
 0x1fa   :  { %v531_v22 = vsub.f32 %v1941_v28, %v498_v42  ;;  %v527_v59 = vsub.f32 %v1930_v26, %v478_v63  ;;  %v1409_v26 = vsel %vm854_vm2, 1.0, %v2704_v30  ;;  %v608_v42 = vmul.f32 1.442695, %v2707_v45 }
 0x1fc   :  { %652 = vadd.xlane.f32.xlu2 %v1485_v47  ;;  %676 = vadd.xlane.f32.xlu0 %v1487_v44  ;;  %v1493_v34 = vpop.eup %1492  ;;  %v558_v13 = vmul.f32 1.442695, %v531_v22  ;;  %v550_v58 = vmul.f32 1.442695, %v527_v59 }
 0x1fe   :  { %1494 = vpow2.f32 %v558_v13  ;;  %v741_v13 = vld [vmem:[#allocation4 + $0x60] sm:$0xff] }
 0x1ff   :  { %1496 = vpow2.f32 %v550_v58 }
 0x200   :  { %1498 = vpow2.f32 %v592_v48  ;;  %v602_v48 = vmul.f32 1.442695, %v2709_v55  ;;  %v734_v55 = vld [vmem:[#allocation4 + $0x28] sm:$0xff] }
 0x201   :  { %654 = vadd.xlane.f32.xlu1 %v1489_v43  ;;  %v834_v50 = vpop.permute.xlu1 %833  ;;  %v779_v61 = vpop.permute.xlu0 %778 }
 0x202   :  { %vm844_vm15 = vcmp.ge.f32.partialorder %v1907_v18, %v779_v61  ;;  %vm855_vm3 = vcmp.ge.f32.partialorder %v1899_v16, %v834_v50  ;;  %v2706_v16 = vsub.f32 %v2002_v40, %v2014_v46  ;;  %v2708_v40 = vsub.f32 %v2034_v52, %v2045_v60  ;;  %v616_v50 = vld [vmem:[#allocation3] sm:$0xff] }
 0x203   :  { %v1399_v1 = vsel %vm844_vm15, 1.0, %v2704_v30  ;;  %v1410_v2 = vsel %vm855_vm3, 1.0, %v2704_v30 }
 0x204   :  { %668 = vadd.xlane.f32.xlu2 %v1491_v10  ;;  %v1495_v18 = vpop.eup %1494  ;;  %v600_v46 = vmul.f32 1.442695, %v2708_v40 }
 0x205   :  { %v1497_v36 = vpop.eup %1496 }
 0x206   :  { %v1499_v17 = vpop.eup %1498 }
 0x207   :  { %v636_v63 = vmul.f32 %v1499_v17, %v620_v32 }
 0x209   :  { %678 = vadd.xlane.f32.xlu1 %v1493_v34  ;;  %v819_v37 = vpop.permute.xlu1 %818  ;;  %v839_v57 = vpop.permute.xlu0 %838 }
 0x20a   :  { %vm852_vm0 = vcmp.ge.f32.partialorder %v1941_v28, %v819_v37  ;;  %vm856_vm1 = vcmp.ge.f32.partialorder %v1950_v35, %v839_v57  ;;  %v584_v35 = vmul.f32 1.442695, %v2706_v16  ;;  %v737_v37 = vld [vmem:[#allocation4 + $0x40] sm:$0xff] }
 0x20b   :  { %v1407_v38 = vsel %vm852_vm0, 1.0, %v2704_v30  ;;  %v1411_v28 = vsel %vm856_vm1, 1.0, %v2704_v30  ;;  %v628_v57 = vld [vmem:[#allocation3 + $0x60] sm:$0xff] }
 0x20c   :  { %895 = vadd.xlane.f32.xlu2 %v1399_v1  ;;  %911 = vadd.xlane.f32.xlu0 %v1407_v38  ;;  %1500 = vpow2.f32 %v584_v35  ;;  %v624_v16 = vld [vmem:[#allocation3 + $0x40] sm:$0xff]  ;;  %v2710_v35 = vsub.f32 %v2071_v7, %v2077_v12 }
 0x20e   :  { %v586_v32 = vmul.f32 1.442695, %v2710_v35  ;;  %v629_v35 = vld [vmem:[#allocation3 + $0x68] sm:$0xff] }
 0x211   :  { %915 = vadd.xlane.f32.xlu1 %v1409_v26 }
 0x212   :  { %v1501_v43 = vpop.eup %1500 }
 0x213   :  { %v632_v22 = vmul.f32 %v1501_v43, %v616_v50 }
 0x214   :  { %662 = vadd.xlane.f32.xlu2 %v1497_v36  ;;  %670 = vadd.xlane.f32.xlu0 %v1495_v18 }
 0x21c   :  { %919 = vadd.xlane.f32.xlu2 %v1411_v28  ;;  %917 = vadd.xlane.f32.xlu0 %v1410_v2 }
 0x22a   :  { %v890_v19 = vpop.xlane.xlu2 %889 }
 0x22b   :  { %v921_v49 = vadd.f32 %v890_v19, %v729_v62 }
 0x22d   :  { %937 = vst.msk [vmem:[#allocation4] sm:$0xff] %vm311_vm12, %v921_v49 }
 0x232   :  { %v657_v30 = vpop.xlane.xlu2 %656 }
 0x233   :  { %v684_v47 = vadd.f32 %v657_v30, %v636_v63 }
 0x234   :  { %v1084_v44 = vld [vmem:[#allocation4] sm:$0xff]  ;;  %v898_v33 = vpop.xlane.xlu1 %897 }
 0x235   :  { %1502 = vrcp.f32 %v1084_v44  ;;  %701 = vst.msk [vmem:[#allocation3 + $0x20] sm:$0xff] %vm311_vm12, %v684_v47  ;;  %v925_v6 = vadd.f32 %v898_v33, %v733_v5  ;;  %v1111_v1 = vand.u32 2147483648, %v1084_v44  ;;  %v1109_v36 = vand.u32 2147483647, %v1084_v44  ;;  %v960_v5 = vld [vmem:[#allocation2 + $0x20] sm:$0xff] }
 0x236   :  { %1504 = vpow2.f32 %v608_v42  ;;  %vm1105_vm5 = vweird.f32 %v1084_v44 }
 0x237   :  { %941 = vst.msk [vmem:[#allocation4 + $0x20] sm:$0xff] %vm311_vm12, %v925_v6  ;;  %1506 = vpow2.f32 %v600_v46  ;;  %v1112_v49 = vor.u32 1.1754944e-38, %v1111_v1  ;;  %vm1110_vm7 = vcmp.eq.f32.partialorder %v1109_v36, 8.507059e+37 }
 0x23b   :  { %v1503_v10 = vpop.eup %1502 }
 0x23c   :  { %v1101_v59 = vmul.f32 %v1503_v10, %v1084_v44  ;;  %v976_v61 = vld [vmem:[#allocation3 + $0x20] sm:$0xff]  ;;  %v649_v34 = vpop.xlane.xlu1 %648  ;;  %v1505_v26 = vpop.eup %1504  ;;  %vm1106_vm4 = vweird.f32 %v1503_v10  ;;  %v2711_v44 = vsub.f32 %v2115_v31, %v2119_v41 }
 0x23d   :  { %1508 = vlog2.f32 %v976_v61  ;;  %v680_v51 = vadd.f32 %v649_v34, %v632_v22  ;;  %v1507_v2 = vpop.eup %1506  ;;  %vm1107_vm6 = vmor %vm1105_vm5, %vm1106_vm4  ;;  %v644_v17 = vmul.f32 %v1505_v26, %v628_v57  ;;  %v730_v22 = vld [vmem:[#allocation4 + $0x8] sm:$0xff]  ;;  %v2712_v34 = vsub.f32 %v2073_v8, %v2082_v15 }
 0x23e   :  { %v1102_v56 = vsub.f32 1.0, %v1101_v59  ;;  %v914_v58 = vpop.xlane.xlu2 %913  ;;  %v2275_v38 = vld [vmem:[#allocation4 + $0x20] sm:$0xff]  ;;  %v610_v45 = vmul.f32 1.442695, %v2711_v44  ;;  %v640_v42 = vmul.f32 %v1507_v2, %v624_v16  ;;  %v625_v26 = vld [vmem:[#allocation3 + $0x48] sm:$0xff] }
 0x23f   :  { %697 = vst.msk [vmem:[#allocation3] sm:$0xff] %vm311_vm12, %v680_v51  ;;  %v933_v52 = vadd.f32 %v914_v58, %v741_v13  ;;  %v906_v60 = vpop.xlane.xlu0 %905  ;;  %1510 = vrcp.f32 %v2275_v38  ;;  %v1171_v50 = vand.u32 2147483648, %v2275_v38  ;;  %v594_v13 = vmul.f32 1.442695, %v2712_v34 }
 0x240   :  { %v1103_v18 = vmul.f32 %v1503_v10, %v1102_v56  ;;  %v929_v28 = vadd.f32 %v906_v60, %v737_v37  ;;  %1512 = vpow2.f32 %v602_v48  ;;  %v738_v56 = vld [vmem:[#allocation4 + $0x48] sm:$0xff]  ;;  %v2713_v37 = vsub.f32 %v2095_v20, %v2098_v23  ;;  %v956_v20 = vld [vmem:[#allocation2] sm:$0xff] }
 0x241   :  { %949 = vst.msk [vmem:[#allocation4 + $0x60] sm:$0xff] %vm311_vm12, %v933_v52  ;;  %vm1165_vm9 = vweird.f32 %v2275_v38  ;;  %v1172_v8 = vor.u32 1.1754944e-38, %v1171_v50 }
 0x242   :  { %v1104_v62 = vadd.f32 %v1503_v10, %v1103_v18  ;;  %945 = vst.msk [vmem:[#allocation4 + $0x40] sm:$0xff] %vm311_vm12, %v929_v28  ;;  %v596_v1 = vmul.f32 1.442695, %v2713_v37  ;;  %v617_v18 = vld [vmem:[#allocation3 + $0x8] sm:$0xff] }
 0x243   :  { %v1509_v19 = vpop.eup %1508 }
 0x244   :  { %v1108_v63 = vsel %vm1107_vm6, %v1503_v10, %v1104_v62  ;;  %v997_v30 = vmul.f32 0.6931472, %v1509_v19  ;;  %v673_v47 = vpop.xlane.xlu1 %672 }
 0x245   :  { %v1113_v0 = vsel %vm1110_vm7, %v1112_v49, %v1108_v63  ;;  %v692_v3 = vadd.f32 %v673_v47, %v644_v17  ;;  %v1511_v33 = vpop.eup %1510 }
 0x246   :  { %1340 = vst.msk [vmem:[%s2688_s3] sm:$0xff] %vm311_vm12, %v1113_v0  ;;  %v1024_v7 = vadd.f32 %v997_v30, %v960_v5  ;;  %v972_v12 = vld [vmem:[#allocation3] sm:$0xff]  ;;  %v1161_v6 = vmul.f32 %v1511_v33, %v2275_v38  ;;  %vm1166_vm8 = vweird.f32 %v1511_v33  ;;  %v1513_v61 = vpop.eup %1512  ;;  %v2716_v5 = vsub.f32 %v2130_v54, %v2137_v11 }
 0x247   :  { %1514 = vlog2.f32 %v972_v12  ;;  %709 = vst.msk [vmem:[#allocation3 + $0x60] sm:$0xff] %vm311_vm12, %v692_v3  ;;  %v665_v43 = vpop.xlane.xlu0 %664  ;;  %vm2318_vm10 = vmor %vm1165_vm9, %vm1166_vm8  ;;  %v641_v30 = vmul.f32 %v1513_v61, %v625_v26  ;;  %v2717_v54 = vsub.f32 %v2148_v24, %v2151_v39 }
 0x248   :  { %1516 = vpow2.f32 %v586_v32  ;;  %v1056_v40 = vsub.f32 %v1024_v7, %v2101_v25  ;;  %v2297_v46 = vld [vmem:[#allocation4 + $0x60] sm:$0xff]  ;;  %v688_v31 = vadd.f32 %v665_v43, %v640_v42  ;;  %v1162_v41 = vsub.f32 1.0, %v1161_v6 }
 0x249   :  { %1518 = vrcp.f32 %v2297_v46  ;;  %v2305_v10 = vld [vmem:[#allocation4 + $0x40] sm:$0xff]  ;;  %v1169_v25 = vand.u32 2147483647, %v2275_v38  ;;  %v2338_v0 = vmul.f32 1.442695, %v2716_v5  ;;  %v1291_v12 = vand.u32 2147483648, %v2297_v46 }
 0x24a   :  { %1520 = vpow2.f32 %v610_v45  ;;  %1072 = vst.msk [vmem:[%s2689_s2 + $0x20] sm:$0xff] %vm311_vm12, %v1056_v40  ;;  %v1163_v59 = vmul.f32 %v1511_v33, %v1162_v41  ;;  %v1289_v7 = vand.u32 2147483647, %v2297_v46  ;;  %v590_v11 = vmul.f32 1.442695, %v2717_v54 }
 0x24b   :  { %1522 = vrcp.f32 %v2305_v10  ;;  %705 = vst.msk [vmem:[#allocation3 + $0x40] sm:$0xff] %vm311_vm12, %v688_v31  ;;  %vm1170_vm11 = vcmp.eq.f32.partialorder %v1169_v25, 8.507059e+37  ;;  %vm1285_vm14 = vweird.f32 %v2297_v46  ;;  %v1229_v31 = vand.u32 2147483647, %v2305_v10 }
 0x24c   :  { %v892_v51 = vpop.xlane.xlu1 %891  ;;  %v1164_v52 = vadd.f32 %v1511_v33, %v1163_v59  ;;  %v1231_v41 = vand.u32 2147483648, %v2305_v10  ;;  %vm1290_vm2 = vcmp.eq.f32.partialorder %v1289_v7, 8.507059e+37  ;;  %vm1225_vm3 = vweird.f32 %v2305_v10 }
 0x24d   :  { %v1515_v58 = vpop.eup %1514  ;;  %v922_v60 = vadd.f32 %v892_v51, %v730_v22  ;;  %vm1230_vm4 = vcmp.eq.f32.partialorder %v1229_v31, 8.507059e+37 }
 0x24e   :  { %v1517_v36 = vpop.eup %1516  ;;  %v989_v15 = vmul.f32 0.6931472, %v1515_v58  ;;  %v984_v28 = vld [vmem:[#allocation3 + $0x60] sm:$0xff]  ;;  %v908_v2 = vpop.xlane.xlu2 %907  ;;  %v1168_v23 = vsel %vm2318_vm10, %v1511_v33, %v1164_v52  ;;  %v622_v52 = vld [vmem:[#allocation3 + $0x30] sm:$0xff] }
 0x24f   :  { %v2322_v48 = vpop.eup %1518  ;;  %1524 = vlog2.f32 %v984_v28  ;;  %938 = vst.msk [vmem:[#allocation4 + $0x8] sm:$0xff] %vm311_vm12, %v922_v60  ;;  %v930_v38 = vadd.f32 %v908_v2, %v738_v56  ;;  %v900_v62 = vpop.xlane.xlu0 %899  ;;  %v1173_v49 = vsel %vm1170_vm11, %v1172_v8, %v1168_v23  ;;  %v633_v47 = vmul.f32 %v1517_v36, %v617_v18  ;;  %v964_v2 = vld [vmem:[#allocation2 + $0x40] sm:$0xff] }
 0x250   :  { %v1521_v19 = vpop.eup %1520  ;;  %1526 = vpow2.f32 %v594_v13  ;;  %v1020_v17 = vadd.f32 %v989_v15, %v956_v20  ;;  %v1281_v16 = vmul.f32 %v2322_v48, %v2297_v46  ;;  %1344 = vst.msk [vmem:[%s2688_s3 + $0x20] sm:$0xff] %vm311_vm12, %v1173_v49  ;;  %v926_v63 = vadd.f32 %v900_v62, %v734_v55  ;;  %v968_v13 = vld [vmem:[#allocation2 + $0x60] sm:$0xff]  ;;  %v621_v20 = vld [vmem:[#allocation3 + $0x28] sm:$0xff] }
 0x251   :  { %v2329_v32 = vpop.eup %1522  ;;  %1528 = vpow2.f32 %v596_v1  ;;  %946 = vst.msk [vmem:[#allocation4 + $0x48] sm:$0xff] %vm311_vm12, %v930_v38  ;;  %v645_v42 = vmul.f32 %v1521_v19, %v629_v35  ;;  %vm1286_vm13 = vweird.f32 %v2322_v48  ;;  %v1292_v46 = vor.u32 1.1754944e-38, %v1291_v12  ;;  %v739_v12 = vld [vmem:[#allocation4 + $0x50] sm:$0xff] }
 0x252   :  { %v1052_v3 = vsub.f32 %v1020_v17, %v2079_v14  ;;  %v1282_v33 = vsub.f32 1.0, %v1281_v16  ;;  %v1221_v44 = vmul.f32 %v2329_v32, %v2305_v10  ;;  %v980_v45 = vld [vmem:[#allocation3 + $0x40] sm:$0xff]  ;;  %942 = vst.msk [vmem:[#allocation4 + $0x28] sm:$0xff] %vm311_vm12, %v926_v63  ;;  %vm1226_vm15 = vweird.f32 %v2329_v32  ;;  %vm1287_vm0 = vmor %vm1285_vm14, %vm1286_vm13 }
 0x253   :  { %1530 = vlog2.f32 %v980_v45  ;;  %vm1227_vm1 = vmor %vm1225_vm3, %vm1226_vm15  ;;  %v1232_v18 = vor.u32 1.1754944e-38, %v1231_v41  ;;  %v2718_v23 = vsub.f32 %v2162_v4, %v2169_v21 }
 0x254   :  { %1068 = vst.msk [vmem:[%s2689_s2] sm:$0xff] %vm311_vm12, %v1052_v3  ;;  %v1283_v14 = vmul.f32 %v2322_v48, %v1282_v33  ;;  %v1222_v6 = vsub.f32 1.0, %v1221_v44  ;;  %v667_v43 = vpop.xlane.xlu1 %666 }
 0x255   :  { %v1525_v40 = vpop.eup %1524  ;;  %v689_v24 = vadd.f32 %v667_v43, %v641_v30  ;;  %v612_v38 = vmul.f32 1.442695, %v2718_v23 }
 0x256   :  { %v1527_v39 = vpop.eup %1526  ;;  %v1284_v50 = vadd.f32 %v2322_v48, %v1283_v14  ;;  %v1223_v22 = vmul.f32 %v2329_v32, %v1222_v6  ;;  %v1013_v59 = vmul.f32 0.6931472, %v1525_v40  ;;  %v2362_v25 = vld [vmem:[#allocation4 + $0x8] sm:$0xff]  ;;  %v675_v61 = vpop.xlane.xlu2 %674 }
 0x257   :  { %v1529_v34 = vpop.eup %1528  ;;  %1532 = vrcp.f32 %v2362_v25  ;;  %706 = vst.msk [vmem:[#allocation3 + $0x48] sm:$0xff] %vm311_vm12, %v689_v24  ;;  %v651_v51 = vpop.xlane.xlu0 %650  ;;  %v693_v1 = vadd.f32 %v675_v61, %v645_v42  ;;  %v1124_v21 = vand.u32 2147483647, %v2362_v25  ;;  %v1126_v4 = vand.u32 2147483648, %v2362_v25 }
 0x258   :  { %v1288_v56 = vsel %vm1287_vm0, %v2322_v48, %v1284_v50  ;;  %v1224_v58 = vadd.f32 %v2329_v32, %v1223_v22  ;;  %v1032_v37 = vadd.f32 %v1013_v59, %v968_v13  ;;  %v2373_v10 = vld [vmem:[#allocation4 + $0x48] sm:$0xff]  ;;  %v681_v36 = vadd.f32 %v651_v51, %v633_v47 }
 0x259   :  { %v1531_v60 = vpop.eup %1530  ;;  %v1293_v26 = vsel %vm1290_vm2, %v1292_v46, %v1288_v56  ;;  %1534 = vrcp.f32 %v2373_v10  ;;  %v2382_v28 = vld [vmem:[#allocation4 + $0x28] sm:$0xff]  ;;  %710 = vst.msk [vmem:[#allocation3 + $0x68] sm:$0xff] %vm311_vm12, %v693_v1  ;;  %v638_v48 = vmul.f32 %v1529_v34, %v622_v52  ;;  %v2719_v47 = vsub.f32 %v2128_v53, %v2134_v9  ;;  %v735_v34 = vld [vmem:[#allocation4 + $0x30] sm:$0xff] }
 0x25a   :  { %1352 = vst.msk [vmem:[%s2688_s3 + $0x60] sm:$0xff] %vm311_vm12, %v1293_v26  ;;  %v1228_v57 = vsel %vm1227_vm1, %v2329_v32, %v1224_v58  ;;  %v1064_v8 = vsub.f32 %v1032_v37, %v2103_v27  ;;  %v1005_v15 = vmul.f32 0.6931472, %v1531_v60  ;;  %1536 = vrcp.f32 %v2382_v28  ;;  %v731_v56 = vld [vmem:[#allocation4 + $0x10] sm:$0xff]  ;;  %v965_v58 = vld [vmem:[#allocation2 + $0x48] sm:$0xff] }
 0x25b   :  { %v1233_v55 = vsel %vm1230_vm4, %v1232_v18, %v1228_v57  ;;  %1538 = vpow2.f32 %v2338_v0  ;;  %698 = vst.msk [vmem:[#allocation3 + $0x8] sm:$0xff] %vm311_vm12, %v681_v36  ;;  %v637_v32 = vmul.f32 %v1527_v39, %v621_v20  ;;  %v2409_v5 = vmul.f32 1.442695, %v2719_v47  ;;  %v630_v47 = vld [vmem:[#allocation3 + $0x70] sm:$0xff] }
 0x25c   :  { %1348 = vst.msk [vmem:[%s2688_s3 + $0x40] sm:$0xff] %vm311_vm12, %v1233_v55  ;;  %v1028_v27 = vadd.f32 %v1005_v15, %v964_v2  ;;  %v661_v62 = vpop.xlane.xlu1 %660  ;;  %1540 = vpow2.f32 %v590_v11  ;;  %vm1120_vm5 = vweird.f32 %v2362_v25  ;;  %vm2416_vm6 = vcmp.eq.f32.partialorder %v1124_v21, 8.507059e+37 }
 0x25d   :  { %v1533_v19 = vpop.eup %1532  ;;  %1080 = vst.msk [vmem:[%s2689_s2 + $0x60] sm:$0xff] %vm311_vm12, %v1064_v8  ;;  %v686_v49 = vadd.f32 %v661_v62, %v638_v48  ;;  %v1127_v33 = vor.u32 1.1754944e-38, %v1126_v4  ;;  %vm1240_vm8 = vweird.f32 %v2373_v10  ;;  %v1244_v45 = vand.u32 2147483647, %v2373_v10  ;;  %v736_v62 = vld [vmem:[#allocation4 + $0x38] sm:$0xff]  ;;  %v618_v4 = vld [vmem:[#allocation3 + $0x10] sm:$0xff] }
 0x25e   :  { %v1060_v17 = vsub.f32 %v1028_v27, %v2106_v29  ;;  %v1116_v16 = vmul.f32 %v1533_v19, %v2362_v25  ;;  %v981_v35 = vld [vmem:[#allocation3 + $0x48] sm:$0xff]  ;;  %vm1121_vm7 = vweird.f32 %v1533_v19  ;;  %v1246_v11 = vand.u32 2147483648, %v2373_v10 }
 0x25f   :  { %1542 = vlog2.f32 %v981_v35  ;;  %703 = vst.msk [vmem:[#allocation3 + $0x30] sm:$0xff] %vm311_vm12, %v686_v49  ;;  %v659_v63 = vpop.xlane.xlu0 %658  ;;  %v2404_v30 = vpop.eup %1534  ;;  %vm1180_vm9 = vweird.f32 %v2382_v28  ;;  %v1184_v40 = vand.u32 2147483647, %v2382_v28  ;;  %v1186_v31 = vand.u32 2147483648, %v2382_v28  ;;  %vm2440_vm10 = vmor %vm1120_vm5, %vm1121_vm7 }
 0x260   :  { %1544 = vpow2.f32 %v612_v38  ;;  %1076 = vst.msk [vmem:[%s2689_s2 + $0x40] sm:$0xff] %vm311_vm12, %v1060_v17  ;;  %v1117_v29 = vsub.f32 1.0, %v1116_v16  ;;  %v685_v0 = vadd.f32 %v659_v63, %v637_v32  ;;  %v1236_v53 = vmul.f32 %v2404_v30, %v2373_v10  ;;  %v2422_v9 = vpop.eup %1536  ;;  %v985_v7 = vld [vmem:[#allocation3 + $0x68] sm:$0xff] }
 0x261   :  { %v2427_v42 = vpop.eup %1538  ;;  %v1176_v14 = vmul.f32 %v2422_v9, %v2382_v28  ;;  %1546 = vlog2.f32 %v985_v7  ;;  %vm1241_vm11 = vweird.f32 %v2404_v30  ;;  %vm1181_vm13 = vweird.f32 %v2422_v9  ;;  %v1594_v10 = vld [vmem:[#allocation5 + $0x48] sm:$0xff]  ;;  %v2724_v28 = vld [vmem:[#allocation10_spill] sm:$0xff] }
 0x262   :  { %v1118_v44 = vmul.f32 %v1533_v19, %v1117_v29  ;;  %702 = vst.msk [vmem:[#allocation3 + $0x28] sm:$0xff] %vm311_vm12, %v685_v0  ;;  %v1237_v54 = vsub.f32 1.0, %v1236_v53  ;;  %v2432_v6 = vpop.eup %1540  ;;  %v973_v59 = vld [vmem:[#allocation3 + $0x8] sm:$0xff]  ;;  %vm1242_vm14 = vmor %vm1240_vm8, %vm1241_vm11  ;;  %vm1245_vm15 = vcmp.eq.f32.partialorder %v1244_v45, 8.507059e+37  ;;  %v1247_v18 = vor.u32 1.1754944e-38, %v1246_v11 }
 0x263   :  { %v1177_v22 = vsub.f32 1.0, %v1176_v14  ;;  %1548 = vlog2.f32 %v973_v59  ;;  %v1187_v55 = vor.u32 1.1754944e-38, %v1186_v31  ;;  %vm1182_vm0 = vmor %vm1180_vm9, %vm1181_vm13  ;;  %vm1185_vm2 = vcmp.eq.f32.partialorder %v1184_v40, 8.507059e+37  ;;  %v2725_v17 = vld [vmem:[#allocation11_spill] sm:$0xff] }
 0x264   :  { %v1119_v43 = vadd.f32 %v1533_v19, %v1118_v44  ;;  %v910_v41 = vpop.xlane.xlu1 %909  ;;  %v1238_v50 = vmul.f32 %v2404_v30, %v1237_v54  ;;  %v2726_v16 = vsub.f32 %v2724_v28, %v2725_v17  ;;  %v1595_v53 = vld [vmem:[#allocation5 + $0x68] sm:$0xff]  ;;  %v634_v7 = vmul.f32 %v2427_v42, %v618_v4  ;;  %v619_v42 = vld [vmem:[#allocation3 + $0x18] sm:$0xff] }
 0x265   :  { %v1543_v24 = vpop.eup %1542  ;;  %v931_v61 = vadd.f32 %v910_v41, %v739_v12  ;;  %v1178_v52 = vmul.f32 %v2422_v9, %v1177_v22  ;;  %v962_v12 = vld [vmem:[#allocation2 + $0x30] sm:$0xff]  ;;  %v1596_v41 = vld [vmem:[#allocation5 + $0x8] sm:$0xff] }
 0x266   :  { %v2446_v13 = vpop.eup %1544  ;;  %v1123_v46 = vsel %vm2440_vm10, %v1533_v19, %v1119_v43  ;;  %v1007_v25 = vmul.f32 0.6931472, %v1543_v24  ;;  %v978_v51 = vld [vmem:[#allocation3 + $0x30] sm:$0xff]  ;;  %v1239_v1 = vadd.f32 %v2404_v30, %v1238_v50  ;;  %v969_v19 = vld [vmem:[#allocation2 + $0x68] sm:$0xff]  ;;  %v614_v35 = vmul.f32 1.442695, %v2726_v16 }
 0x267   :  { %v1128_v37 = vsel %vm2416_vm6, %v1127_v33, %v1123_v46  ;;  %1550 = vlog2.f32 %v978_v51  ;;  %947 = vst.msk [vmem:[#allocation4 + $0x50] sm:$0xff] %vm311_vm12, %v931_v61  ;;  %v902_v60 = vpop.xlane.xlu2 %901  ;;  %v894_v26 = vpop.xlane.xlu0 %893  ;;  %v1179_v2 = vadd.f32 %v2422_v9, %v1178_v52  ;;  %v957_v33 = vld [vmem:[#allocation2 + $0x8] sm:$0xff]  ;;  %v646_v11 = vmul.f32 %v2446_v13, %v630_v47  ;;  %v1597_v61 = vld [vmem:[#allocation5 + $0x30] sm:$0xff] }
 0x268   :  { %1341 = vst.msk [vmem:[%s2688_s3 + $0x8] sm:$0xff] %vm311_vm12, %v1128_v37  ;;  %v1029_v36 = vadd.f32 %v1007_v25, %v965_v58  ;;  %v927_v57 = vadd.f32 %v902_v60, %v735_v34  ;;  %v1547_v8 = vpop.eup %1546  ;;  %v1243_v15 = vsel %vm1242_vm14, %v2404_v30, %v1239_v1  ;;  %v923_v20 = vadd.f32 %v894_v26, %v731_v56  ;;  %v961_v59 = vld [vmem:[#allocation2 + $0x28] sm:$0xff]  ;;  %v626_v51 = vld [vmem:[#allocation3 + $0x50] sm:$0xff]  ;;  %v2727_v56 = vld [vmem:[#allocation6_spill] sm:$0xff] }
 0x269   :  { %v977_v48 = vld [vmem:[#allocation3 + $0x28] sm:$0xff]  ;;  %v1248_v23 = vsel %vm1245_vm15, %v1247_v18, %v1243_v15  ;;  %v1015_v27 = vmul.f32 0.6931472, %v1547_v8  ;;  %v1183_v21 = vsel %vm1182_vm0, %v2422_v9, %v1179_v2  ;;  %v1549_v49 = vpop.eup %1548  ;;  %v635_v25 = vmul.f32 %v2432_v6, %v619_v42  ;;  %v2730_v26 = vld [vmem:[#allocation8_spill] sm:$0xff]  ;;  %v2731_v18 = vld [vmem:[#allocation9_spill] sm:$0xff] }
 0x26a   :  { %v1061_v38 = vsub.f32 %v1029_v36, %v1594_v10  ;;  %1552 = vlog2.f32 %v977_v48  ;;  %943 = vst.msk [vmem:[#allocation4 + $0x30] sm:$0xff] %vm311_vm12, %v927_v57  ;;  %v1188_v32 = vsel %vm1185_vm2, %v1187_v55, %v1183_v21  ;;  %v991_v0 = vmul.f32 0.6931472, %v1549_v49  ;;  %v2728_v58 = vld [vmem:[#allocation7_spill] sm:$0xff] }
 0x26b   :  { %1349 = vst.msk [vmem:[%s2688_s3 + $0x48] sm:$0xff] %vm311_vm12, %v1248_v23  ;;  %v1033_v63 = vadd.f32 %v1015_v27, %v969_v19  ;;  %1554 = vpow2.f32 %v2409_v5  ;;  %v2729_v37 = vsub.f32 %v2727_v56, %v2728_v58  ;;  %v2732_v36 = vsub.f32 %v2730_v26, %v2731_v18  ;;  %v1598_v8 = vld [vmem:[#allocation5 + $0x28] sm:$0xff]  ;;  %v623_v58 = vld [vmem:[#allocation3 + $0x38] sm:$0xff]  ;;  %v958_v26 = vld [vmem:[#allocation2 + $0x10] sm:$0xff] }
 0x26c   :  { %1077 = vst.msk [vmem:[%s2689_s2 + $0x48] sm:$0xff] %vm311_vm12, %v1061_v38  ;;  %v904_v30 = vpop.xlane.xlu1 %903  ;;  %v1021_v54 = vadd.f32 %v991_v0, %v957_v33  ;;  %v631_v38 = vld [vmem:[#allocation3 + $0x78] sm:$0xff] }
 0x26d   :  { %v1551_v29 = vpop.eup %1550  ;;  %1345 = vst.msk [vmem:[%s2688_s3 + $0x28] sm:$0xff] %vm311_vm12, %v1188_v32  ;;  %v928_v3 = vadd.f32 %v904_v30, %v736_v62  ;;  %v1065_v9 = vsub.f32 %v1033_v63, %v1595_v53  ;;  %v598_v1 = vmul.f32 1.442695, %v2729_v37  ;;  %v606_v57 = vmul.f32 1.442695, %v2732_v36 }
 0x26e   :  { %v1001_v44 = vmul.f32 0.6931472, %v1551_v29  ;;  %v2488_v45 = vld [vmem:[#allocation4 + $0x50] sm:$0xff]  ;;  %939 = vst.msk [vmem:[#allocation4 + $0x10] sm:$0xff] %vm311_vm12, %v923_v20  ;;  %v1053_v24 = vsub.f32 %v1021_v54, %v1596_v41  ;;  %v959_v29 = vld [vmem:[#allocation2 + $0x18] sm:$0xff] }
 0x26f   :  { %1556 = vrcp.f32 %v2488_v45  ;;  %944 = vst.msk [vmem:[#allocation4 + $0x38] sm:$0xff] %vm311_vm12, %v928_v3  ;;  %v653_v5 = vpop.xlane.xlu2 %652  ;;  %v677_v14 = vpop.xlane.xlu0 %676  ;;  %v1259_v20 = vand.u32 2147483647, %v2488_v45  ;;  %v1261_v27 = vand.u32 2147483648, %v2488_v45  ;;  %vm1255_vm3 = vweird.f32 %v2488_v45 }
 0x270   :  { %v1553_v43 = vpop.eup %1552  ;;  %1558 = vpow2.f32 %v614_v35  ;;  %1081 = vst.msk [vmem:[%s2689_s2 + $0x68] sm:$0xff] %vm311_vm12, %v1065_v9  ;;  %v1026_v40 = vadd.f32 %v1001_v44, %v962_v12  ;;  %v682_v31 = vadd.f32 %v653_v5, %v634_v7  ;;  %v694_v22 = vadd.f32 %v677_v14, %v646_v11  ;;  %v732_v11 = vld [vmem:[#allocation4 + $0x18] sm:$0xff] }
 0x271   :  { %v999_v39 = vmul.f32 0.6931472, %v1553_v43  ;;  %v2499_v50 = vld [vmem:[#allocation4 + $0x30] sm:$0xff]  ;;  %v1555_v13 = vpop.eup %1554  ;;  %1069 = vst.msk [vmem:[%s2689_s2 + $0x8] sm:$0xff] %vm311_vm12, %v1053_v24  ;;  %vm2540_vm4 = vcmp.eq.f32.partialorder %v1259_v20, 8.507059e+37  ;;  %v1262_v30 = vor.u32 1.1754944e-38, %v1261_v27 }
 0x272   :  { %v1058_v34 = vsub.f32 %v1026_v40, %v1597_v61  ;;  %1560 = vrcp.f32 %v2499_v50  ;;  %699 = vst.msk [vmem:[#allocation3 + $0x10] sm:$0xff] %vm311_vm12, %v682_v31  ;;  %v642_v10 = vmul.f32 %v1555_v13, %v626_v51  ;;  %v1199_v62 = vand.u32 2147483647, %v2499_v50  ;;  %v740_v14 = vld [vmem:[#allocation4 + $0x58] sm:$0xff]  ;;  %v970_v27 = vld [vmem:[#allocation2 + $0x70] sm:$0xff] }
 0x273   :  { %v1025_v46 = vadd.f32 %v999_v39, %v961_v59  ;;  %711 = vst.msk [vmem:[#allocation3 + $0x70] sm:$0xff] %vm311_vm12, %v694_v22  ;;  %v1201_v49 = vand.u32 2147483648, %v2499_v50  ;;  %vm1195_vm5 = vweird.f32 %v2499_v50 }
 0x274   :  { %1074 = vst.msk [vmem:[%s2689_s2 + $0x30] sm:$0xff] %vm311_vm12, %v1058_v34  ;;  %v655_v52 = vpop.xlane.xlu1 %654  ;;  %vm2546_vm6 = vcmp.eq.f32.partialorder %v1199_v62, 8.507059e+37 }
 0x275   :  { %v1557_v60 = vpop.eup %1556  ;;  %v1057_v15 = vsub.f32 %v1025_v46, %v1598_v8  ;;  %v2518_v2 = vld [vmem:[#allocation4 + $0x10] sm:$0xff]  ;;  %v683_v6 = vadd.f32 %v655_v52, %v635_v25  ;;  %v1202_v33 = vor.u32 1.1754944e-38, %v1201_v49 }
 0x276   :  { %v1559_v55 = vpop.eup %1558  ;;  %v1251_v48 = vmul.f32 %v1557_v60, %v2488_v45  ;;  %1562 = vrcp.f32 %v2518_v2  ;;  %v2524_v23 = vld [vmem:[#allocation4 + $0x38] sm:$0xff]  ;;  %vm1256_vm1 = vweird.f32 %v1557_v60  ;;  %v1139_v53 = vand.u32 2147483647, %v2518_v2 }
 0x277   :  { %1073 = vst.msk [vmem:[%s2689_s2 + $0x28] sm:$0xff] %vm311_vm12, %v1057_v15  ;;  %1564 = vrcp.f32 %v2524_v23  ;;  %v669_v19 = vpop.xlane.xlu2 %668  ;;  %v647_v35 = vmul.f32 %v1559_v55, %v631_v38  ;;  %v1141_v9 = vand.u32 2147483648, %v2518_v2  ;;  %vm1257_vm7 = vmor %vm1255_vm3, %vm1256_vm1  ;;  %v1214_v42 = vand.u32 2147483647, %v2524_v23 }
 0x278   :  { %v2533_v21 = vpop.eup %1560  ;;  %1566 = vpow2.f32 %v598_v1  ;;  %v1252_v4 = vsub.f32 1.0, %v1251_v48  ;;  %700 = vst.msk [vmem:[#allocation3 + $0x18] sm:$0xff] %vm311_vm12, %v683_v6  ;;  %v690_v28 = vadd.f32 %v669_v19, %v642_v10  ;;  %v1216_v59 = vand.u32 2147483648, %v2524_v23  ;;  %v742_v10 = vld [vmem:[#allocation4 + $0x68] sm:$0xff]  ;;  %v1599_v19 = vld [vmem:[#allocation5 + $0x10] sm:$0xff] }
 0x279   :  { %1568 = vpow2.f32 %v606_v57  ;;  %v1191_v17 = vmul.f32 %v2533_v21, %v2499_v50  ;;  %v974_v16 = vld [vmem:[#allocation3 + $0x10] sm:$0xff]  ;;  %vm1196_vm8 = vweird.f32 %v2533_v21  ;;  %vm1135_vm13 = vweird.f32 %v2518_v2 }
 0x27a   :  { %v1253_v32 = vmul.f32 %v1557_v60, %v1252_v4  ;;  %1570 = vlog2.f32 %v974_v16  ;;  %707 = vst.msk [vmem:[#allocation3 + $0x50] sm:$0xff] %vm311_vm12, %v690_v28  ;;  %v986_v44 = vld [vmem:[#allocation3 + $0x70] sm:$0xff]  ;;  %vm1197_vm9 = vmor %vm1195_vm5, %vm1196_vm8  ;;  %v1142_v55 = vor.u32 1.1754944e-38, %v1141_v9  ;;  %vm1210_vm15 = vweird.f32 %v2524_v23  ;;  %v627_v4 = vld [vmem:[#allocation3 + $0x58] sm:$0xff] }
 0x27b   :  { %v1192_v47 = vsub.f32 1.0, %v1191_v17  ;;  %1572 = vlog2.f32 %v986_v44  ;;  %vm1140_vm0 = vcmp.eq.f32.partialorder %v1139_v53, 8.507059e+37  ;;  %v1217_v62 = vor.u32 1.1754944e-38, %v1216_v59 }
 0x27c   :  { %v2550_v0 = vpop.eup %1562  ;;  %v1254_v3 = vadd.f32 %v1557_v60, %v1253_v32  ;;  %v679_v7 = vpop.xlane.xlu1 %678  ;;  %vm1215_vm3 = vcmp.eq.f32.partialorder %v1214_v42, 8.507059e+37 }
 0x27d   :  { %v2554_v12 = vpop.eup %1564  ;;  %v1193_v54 = vmul.f32 %v2533_v21, %v1192_v47  ;;  %v1131_v5 = vmul.f32 %v2550_v0, %v2518_v2  ;;  %v695_v41 = vadd.f32 %v679_v7, %v647_v35  ;;  %vm1136_vm10 = vweird.f32 %v2550_v0 }
 0x27e   :  { %v1567_v43 = vpop.eup %1566  ;;  %v1258_v40 = vsel %vm1257_vm7, %v1557_v60, %v1254_v3  ;;  %v1206_v31 = vmul.f32 %v2554_v12, %v2524_v23  ;;  %vm1211_vm11 = vweird.f32 %v2554_v12  ;;  %vm2597_vm14 = vmor %vm1135_vm13, %vm1136_vm10 }
 0x27f   :  { %v2566_v45 = vpop.eup %1568  ;;  %v1263_v24 = vsel %vm2540_vm4, %v1262_v30, %v1258_v40  ;;  %v1194_v39 = vadd.f32 %v2533_v21, %v1193_v54  ;;  %v1132_v22 = vsub.f32 1.0, %v1131_v5  ;;  %v975_v61 = vld [vmem:[#allocation3 + $0x18] sm:$0xff]  ;;  %v896_v34 = vpop.xlane.xlu2 %895  ;;  %712 = vst.msk [vmem:[#allocation3 + $0x78] sm:$0xff] %vm311_vm12, %v695_v41  ;;  %v639_v15 = vmul.f32 %v1567_v43, %v623_v58  ;;  %vm1212_vm2 = vmor %vm1210_vm15, %vm1211_vm11  ;;  %v966_v54 = vld [vmem:[#allocation2 + $0x50] sm:$0xff] }
 0x280   :  { %v912_v13 = vpop.xlane.xlu0 %911  ;;  %v1571_v46 = vpop.eup %1570  ;;  %1350 = vst.msk [vmem:[%s2688_s3 + $0x50] sm:$0xff] %vm311_vm12, %v1263_v24  ;;  %v1207_v25 = vsub.f32 1.0, %v1206_v31  ;;  %1574 = vlog2.f32 %v975_v61  ;;  %v924_v51 = vadd.f32 %v896_v34, %v732_v11  ;;  %v643_v9 = vmul.f32 %v2566_v45, %v627_v4  ;;  %v1601_v11 = vld [vmem:[#allocation5 + $0x18] sm:$0xff]  ;;  %v1602_v31 = vld [vmem:[#allocation5 + $0x50] sm:$0xff] }
 0x281   :  { %v932_v56 = vadd.f32 %v912_v13, %v740_v14  ;;  %v1198_v37 = vsel %vm1197_vm9, %v2533_v21, %v1194_v39  ;;  %v1133_v1 = vmul.f32 %v2550_v0, %v1132_v22  ;;  %v993_v52 = vmul.f32 0.6931472, %v1571_v46  ;;  %v982_v60 = vld [vmem:[#allocation3 + $0x50] sm:$0xff]  ;;  %v1573_v36 = vpop.eup %1572  ;;  %v744_v41 = vld [vmem:[#allocation4 + $0x78] sm:$0xff] }
 0x282   :  { %v1203_v50 = vsel %vm2546_vm6, %v1202_v33, %v1198_v37  ;;  %v1208_v18 = vmul.f32 %v2554_v12, %v1207_v25  ;;  %1576 = vlog2.f32 %v982_v60  ;;  %940 = vst.msk [vmem:[#allocation4 + $0x18] sm:$0xff] %vm311_vm12, %v924_v51  ;;  %v1017_v20 = vmul.f32 0.6931472, %v1573_v36  ;;  %v743_v45 = vld [vmem:[#allocation4 + $0x70] sm:$0xff]  ;;  %v971_v46 = vld [vmem:[#allocation2 + $0x78] sm:$0xff] }
 0x283   :  { %1346 = vst.msk [vmem:[%s2688_s3 + $0x30] sm:$0xff] %vm311_vm12, %v1203_v50  ;;  %v1134_v57 = vadd.f32 %v2550_v0, %v1133_v1  ;;  %v1022_v8 = vadd.f32 %v993_v52, %v958_v26  ;;  %v1603_v60 = vld [vmem:[#allocation5 + $0x78] sm:$0xff] }
 0x284   :  { %v1209_v48 = vadd.f32 %v2554_v12, %v1208_v18  ;;  %948 = vst.msk [vmem:[#allocation4 + $0x58] sm:$0xff] %vm311_vm12, %v932_v56  ;;  %v916_v38 = vpop.xlane.xlu1 %915  ;;  %v1034_v17 = vadd.f32 %v1017_v20, %v970_v27 }
 0x285   :  { %v1138_v2 = vsel %vm2597_vm14, %v2550_v0, %v1134_v57  ;;  %v1054_v21 = vsub.f32 %v1022_v8, %v1599_v19  ;;  %v934_v32 = vadd.f32 %v916_v38, %v742_v10  ;;  %v1600_v0 = vld [vmem:[#allocation5 + $0x70] sm:$0xff] }
 0x286   :  { %v1575_v49 = vpop.eup %1574  ;;  %v1143_v23 = vsel %vm1140_vm0, %v1142_v55, %v1138_v2  ;;  %v1213_v28 = vsel %vm1212_vm2, %v2554_v12, %v1209_v48  ;;  %v1066_v3 = vsub.f32 %v1034_v17, %v1600_v0  ;;  %v987_v33 = vld [vmem:[#allocation3 + $0x78] sm:$0xff] }
 0x287   :  { %1342 = vst.msk [vmem:[%s2688_s3 + $0x10] sm:$0xff] %vm311_vm12, %v1143_v23  ;;  %v1218_v16 = vsel %vm1215_vm3, %v1217_v62, %v1213_v28  ;;  %v995_v35 = vmul.f32 0.6931472, %v1575_v49  ;;  %v663_v63 = vpop.xlane.xlu2 %662  ;;  %1578 = vlog2.f32 %v987_v33 }
 0x288   :  { %v671_v30 = vpop.xlane.xlu0 %670  ;;  %v1577_v47 = vpop.eup %1576  ;;  %1347 = vst.msk [vmem:[%s2688_s3 + $0x38] sm:$0xff] %vm311_vm12, %v1218_v16  ;;  %v687_v53 = vadd.f32 %v663_v63, %v639_v15 }
 0x289   :  { %1070 = vst.msk [vmem:[%s2689_s2 + $0x10] sm:$0xff] %vm311_vm12, %v1054_v21  ;;  %v1023_v44 = vadd.f32 %v995_v35, %v959_v29  ;;  %v1009_v7 = vmul.f32 0.6931472, %v1577_v47  ;;  %v1087_v12 = vld [vmem:[#allocation4 + $0x18] sm:$0xff]  ;;  %v691_v5 = vadd.f32 %v671_v30, %v643_v9 }
 0x28a   :  { %1082 = vst.msk [vmem:[%s2689_s2 + $0x70] sm:$0xff] %vm311_vm12, %v1066_v3  ;;  %1580 = vrcp.f32 %v1087_v12  ;;  %v1154_v50 = vand.u32 2147483647, %v1087_v12  ;;  %v1156_v18 = vand.u32 2147483648, %v1087_v12  ;;  %vm1150_vm4 = vweird.f32 %v1087_v12  ;;  %v967_v47 = vld [vmem:[#allocation2 + $0x58] sm:$0xff] }
 0x28b   :  { %v1055_v14 = vsub.f32 %v1023_v44, %v1601_v11  ;;  %v1030_v43 = vadd.f32 %v1009_v7, %v966_v54  ;;  %v2627_v40 = vld [vmem:[#allocation4 + $0x58] sm:$0xff]  ;;  %950 = vst.msk [vmem:[#allocation4 + $0x68] sm:$0xff] %vm311_vm12, %v934_v32 }
 0x28c   :  { %1582 = vrcp.f32 %v2627_v40  ;;  %704 = vst.msk [vmem:[#allocation3 + $0x38] sm:$0xff] %vm311_vm12, %v687_v53  ;;  %v1276_v15 = vand.u32 2147483648, %v2627_v40  ;;  %v1274_v48 = vand.u32 2147483647, %v2627_v40  ;;  %v1157_v20 = vor.u32 1.1754944e-38, %v1156_v18  ;;  %v963_v32 = vld [vmem:[#allocation2 + $0x38] sm:$0xff] }
 0x28d   :  { %1071 = vst.msk [vmem:[%s2689_s2 + $0x18] sm:$0xff] %vm311_vm12, %v1055_v14  ;;  %v1062_v42 = vsub.f32 %v1030_v43, %v1602_v31  ;;  %v1579_v24 = vpop.eup %1578  ;;  %vm1155_vm7 = vcmp.eq.f32.partialorder %v1154_v50, 8.507059e+37  ;;  %vm1270_vm8 = vweird.f32 %v2627_v40  ;;  %v1604_v44 = vld [vmem:[#allocation5 + $0x38] sm:$0xff] }
 0x28e   :  { %708 = vst.msk [vmem:[#allocation3 + $0x58] sm:$0xff] %vm311_vm12, %v691_v5  ;;  %v1019_v61 = vmul.f32 0.6931472, %v1579_v24  ;;  %v1277_v19 = vor.u32 1.1754944e-38, %v1276_v15  ;;  %vm1275_vm10 = vcmp.eq.f32.partialorder %v1274_v48, 8.507059e+37  ;;  %v1605_v54 = vld [vmem:[#allocation5 + $0x58] sm:$0xff] }
 0x28f   :  { %1078 = vst.msk [vmem:[%s2689_s2 + $0x50] sm:$0xff] %vm311_vm12, %v1062_v42  ;;  %v920_v39 = vpop.xlane.xlu2 %919 }
 0x290   :  { %v918_v22 = vpop.xlane.xlu0 %917  ;;  %v1581_v59 = vpop.eup %1580  ;;  %v936_v34 = vadd.f32 %v920_v39, %v744_v41  ;;  %v1035_v56 = vadd.f32 %v1019_v61, %v971_v46 }
 0x291   :  { %v935_v13 = vadd.f32 %v918_v22, %v743_v45  ;;  %v1146_v25 = vmul.f32 %v1581_v59, %v1087_v12  ;;  %vm1151_vm1 = vweird.f32 %v1581_v59 }
 0x292   :  { %v1583_v51 = vpop.eup %1582  ;;  %v2641_v58 = vld [vmem:[#allocation4 + $0x68] sm:$0xff]  ;;  %952 = vst.msk [vmem:[#allocation4 + $0x78] sm:$0xff] %vm311_vm12, %v936_v34  ;;  %v1067_v26 = vsub.f32 %v1035_v56, %v1603_v60  ;;  %vm1152_vm6 = vmor %vm1150_vm4, %vm1151_vm1 }
 0x293   :  { %v1147_v37 = vsub.f32 1.0, %v1146_v25  ;;  %v1266_v1 = vmul.f32 %v1583_v51, %v2627_v40  ;;  %1584 = vrcp.f32 %v2641_v58  ;;  %v979_v52 = vld [vmem:[#allocation3 + $0x38] sm:$0xff]  ;;  %951 = vst.msk [vmem:[#allocation4 + $0x70] sm:$0xff] %vm311_vm12, %v935_v13  ;;  %vm1271_vm5 = vweird.f32 %v1583_v51 }
 0x294   :  { %1586 = vlog2.f32 %v979_v52  ;;  %1083 = vst.msk [vmem:[%s2689_s2 + $0x78] sm:$0xff] %vm311_vm12, %v1067_v26  ;;  %vm1272_vm9 = vmor %vm1270_vm8, %vm1271_vm5  ;;  %v1306_v63 = vand.u32 2147483648, %v2641_v58  ;;  %v1304_v0 = vand.u32 2147483647, %v2641_v58  ;;  %vm1300_vm13 = vweird.f32 %v2641_v58 }
 0x295   :  { %v1148_v36 = vmul.f32 %v1581_v59, %v1147_v37  ;;  %v1267_v57 = vsub.f32 1.0, %v1266_v1  ;;  %v983_v8 = vld [vmem:[#allocation3 + $0x58] sm:$0xff] }
 0x296   :  { %1588 = vlog2.f32 %v983_v8  ;;  %v1307_v12 = vor.u32 1.1754944e-38, %v1306_v63  ;;  %vm1305_vm15 = vcmp.eq.f32.partialorder %v1304_v0, 8.507059e+37 }
 0x297   :  { %v1149_v6 = vadd.f32 %v1581_v59, %v1148_v36  ;;  %v1268_v55 = vmul.f32 %v1583_v51, %v1267_v57 }
 0x299   :  { %v1585_v10 = vpop.eup %1584  ;;  %v1153_v38 = vsel %vm1152_vm6, %v1581_v59, %v1149_v6  ;;  %v1269_v27 = vadd.f32 %v1583_v51, %v1268_v55  ;;  %v1099_v2 = vld [vmem:[#allocation4 + $0x78] sm:$0xff] }
 0x29a   :  { %v1158_v62 = vsel %vm1155_vm7, %v1157_v20, %v1153_v38  ;;  %v1296_v21 = vmul.f32 %v1585_v10, %v2641_v58  ;;  %1590 = vrcp.f32 %v1099_v2  ;;  %v1098_v4 = vld [vmem:[#allocation4 + $0x70] sm:$0xff]  ;;  %v1587_v49 = vpop.eup %1586  ;;  %vm1301_vm11 = vweird.f32 %v1585_v10 }
 0x29b   :  { %1343 = vst.msk [vmem:[%s2688_s3 + $0x18] sm:$0xff] %vm311_vm12, %v1158_v62  ;;  %v1273_v23 = vsel %vm1272_vm9, %v1583_v51, %v1269_v27  ;;  %v1003_v35 = vmul.f32 0.6931472, %v1587_v49  ;;  %1592 = vrcp.f32 %v1098_v4  ;;  %vm1302_vm14 = vmor %vm1300_vm13, %vm1301_vm11  ;;  %v1336_v41 = vand.u32 2147483648, %v1099_v2 }
 0x29c   :  { %v1589_v28 = vpop.eup %1588  ;;  %v1278_v17 = vsel %vm1275_vm10, %v1277_v19, %v1273_v23  ;;  %v1297_v16 = vsub.f32 1.0, %v1296_v21  ;;  %v1334_v24 = vand.u32 2147483647, %v1099_v2  ;;  %vm1330_vm2 = vweird.f32 %v1099_v2 }
 0x29d   :  { %1351 = vst.msk [vmem:[%s2688_s3 + $0x58] sm:$0xff] %vm311_vm12, %v1278_v17  ;;  %v1011_v30 = vmul.f32 0.6931472, %v1589_v28  ;;  %v1027_v3 = vadd.f32 %v1003_v35, %v963_v32  ;;  %v1321_v22 = vand.u32 2147483648, %v1098_v4  ;;  %v1319_v34 = vand.u32 2147483647, %v1098_v4 }
 0x29e   :  { %v1298_v29 = vmul.f32 %v1585_v10, %v1297_v16  ;;  %v1337_v13 = vor.u32 1.1754944e-38, %v1336_v41  ;;  %vm1335_vm4 = vcmp.eq.f32.partialorder %v1334_v24, 8.507059e+37  ;;  %vm1315_vm5 = vweird.f32 %v1098_v4 }
 0x29f   :  { %v1031_v33 = vadd.f32 %v1011_v30, %v967_v47  ;;  %v1059_v7 = vsub.f32 %v1027_v3, %v1604_v44  ;;  %v1322_v56 = vor.u32 1.1754944e-38, %v1321_v22  ;;  %vm1320_vm7 = vcmp.eq.f32.partialorder %v1319_v34, 8.507059e+37 }
 0x2a0   :  { %v1591_v53 = vpop.eup %1590  ;;  %v1299_v9 = vadd.f32 %v1585_v10, %v1298_v29 }
 0x2a1   :  { %v1063_v5 = vsub.f32 %v1031_v33, %v1605_v54  ;;  %v1326_v11 = vmul.f32 %v1591_v53, %v1099_v2  ;;  %v1593_v14 = vpop.eup %1592  ;;  %1075 = vst.msk [vmem:[%s2689_s2 + $0x38] sm:$0xff] %vm311_vm12, %v1059_v7  ;;  %vm1331_vm0 = vweird.f32 %v1591_v53 }
 0x2a2   :  { %v1303_v43 = vsel %vm1302_vm14, %v1585_v10, %v1299_v9  ;;  %v1311_v42 = vmul.f32 %v1593_v14, %v1098_v4  ;;  %vm1316_vm3 = vweird.f32 %v1593_v14  ;;  %vm1332_vm1 = vmor %vm1330_vm2, %vm1331_vm0 }
 0x2a3   :  { %v1308_v40 = vsel %vm1305_vm15, %v1307_v12, %v1303_v43  ;;  %1079 = vst.msk [vmem:[%s2689_s2 + $0x58] sm:$0xff] %vm311_vm12, %v1063_v5  ;;  %v1327_v31 = vsub.f32 1.0, %v1326_v11  ;;  %vm1317_vm6 = vmor %vm1315_vm5, %vm1316_vm3 }
 0x2a4   :  { %1353 = vst.msk [vmem:[%s2688_s3 + $0x68] sm:$0xff] %vm311_vm12, %v1308_v40  ;;  %v1312_v39 = vsub.f32 1.0, %v1311_v42 }
 0x2a5   :  { %v1328_v45 = vmul.f32 %v1591_v53, %v1327_v31 }
 0x2a6   :  { %v1313_v61 = vmul.f32 %v1593_v14, %v1312_v39 }
 0x2a7   :  { %v1329_v59 = vadd.f32 %v1591_v53, %v1328_v45 }
 0x2a8   :  { %v1314_v25 = vadd.f32 %v1593_v14, %v1313_v61 }
 0x2a9   :  { %v1333_v46 = vsel %vm1332_vm1, %v1591_v53, %v1329_v59 }
 0x2aa   :  { %v1338_v51 = vsel %vm1335_vm4, %v1337_v13, %v1333_v46  ;;  %v1318_v58 = vsel %vm1317_vm6, %v1593_v14, %v1314_v25 }
 0x2ab   :  { %1355 = vst.msk [vmem:[%s2688_s3 + $0x78] sm:$0xff] %vm311_vm12, %v1338_v51  ;;  %v1323_v37 = vsel %vm1320_vm7, %v1322_v56, %v1318_v58 }
 0x2ac   :  { %1354 = vst.msk [vmem:[%s2688_s3 + $0x70] sm:$0xff] %vm311_vm12, %v1323_v37 }

</bundles_post_ra>
